<compile_context>
chip_gen: v6e
topology: v6e:2x2x1
jax: 0.10.0
libtpu: 0.0.40
codegen_flags: <defaults>
</compile_context>

<pallas_src>
import functools

import jax
import jax.numpy as jnp
import numpy as np
from jax import lax
from jax.experimental import pallas as pl
from jax.experimental.pallas import tpu as pltpu


def _output_layer_kernel(hs_ref, w_ref, es_ref, mask_ref,
                         logits_ref, topk_ref, counts_ref, *, n_output):
    """Single-tile body: bilinear score -> standardize -> logits + selection."""
    NEG = -1.0e30  # finite "-inf"; standardized scores are O(1)

    hs = hs_ref[...].astype(jnp.bfloat16)      # (N_H, D)
    w = w_ref[...]                             # (D, D)   bf16 (stored)
    es = es_ref[...]                           # (N_E, D) bf16 (stored)
    maskb = mask_ref[...] > 0                  # (N_H, N_E) bool

    n_h, n_e = maskb.shape
    contract_last = (((1,), (1,)), ((), ()))   # contract lane dim of both operands

    # ---- bilinear matching score S = hs @ W @ es^T (MXU bf16 in / f32 acc) --
    # NOTE: for MXU efficiency on v6e/v7x the caller should batch rows so the
    # LHS M >= 256 and (if tunable) choose D a multiple of 256.
    if n_h <= n_e:
        proj = jnp.dot(hs, w, preferred_element_type=jnp.float32)           # (N_H, D)
        raw = lax.dot_general(proj.astype(jnp.bfloat16), es, contract_last,
                              preferred_element_type=jnp.float32)           # (N_H, N_E)
    else:
        proj_e = lax.dot_general(es, w, contract_last,                      # es @ W^T
                                 preferred_element_type=jnp.float32)        # (N_E, D)
        raw = lax.dot_general(hs, proj_e.astype(jnp.bfloat16), contract_last,
                              preferred_element_type=jnp.float32)           # (N_H, N_E)

    # ---- global standardization: torch .mean() / unbiased .std() ------------
    n = raw.size
    mu = jnp.sum(raw) * (1.0 / n)
    diff = raw - mu
    var = jnp.sum(diff * diff) * (1.0 / max(n - 1, 1))
    s = diff * lax.rsqrt(var + 1e-12)          # reciprocal-multiply, no divide

    # ---- logits = log_softmax(dim=-1) + log_softmax(dim=0)  (f32) -----------
    m0 = jnp.max(s, axis=0, keepdims=True)
    ls0 = (s - m0) - jnp.log(jnp.sum(jnp.exp(s - m0), axis=0, keepdims=True))
    m1 = jnp.max(s, axis=1, keepdims=True)
    ls1 = (s - m1) - jnp.log(jnp.sum(jnp.exp(s - m1), axis=1, keepdims=True))
    logits_ref[...] = ls1 + ls0

    # ---- fused deterministic selection --------------------------------------
    # Reference only uses row_probs / col_probs through argmax / argsort, which
    # are ordering-equivalent to the standardized scores restricted to unmasked
    # positions (softmax is monotone; the clamp(1e-6) only creates ties that
    # cannot displace the per-column maximum).  So: no masked softmax, no
    # normalization/clamp, no full-size prob writeback.
    row_pos = lax.broadcasted_iota(jnp.int32, (n_h, n_e), 0).astype(jnp.float32)
    col_pos = lax.broadcasted_iota(jnp.int32, (n_h, n_e), 1).astype(jnp.float32)

    masked_s = jnp.where(maskb, s, NEG)
    # index = col_probs.argmax(dim=0)  (first occurrence; fully-masked col -> 0)
    col_max = jnp.max(masked_s, axis=0, keepdims=True)                       # (1, N_E)
    index = jnp.min(jnp.where(masked_s == col_max, row_pos, float(n_h)),
                    axis=0, keepdims=True)                                   # (1, N_E)

    sel = maskb & (row_pos == index)                                         # (N_H, N_E)
    counts_ref[...] = jnp.sum(sel.astype(jnp.float32), axis=1,
                              keepdims=True).astype(jnp.int32)               # (N_H, 1)

    # masked top-n_output per row via iterative max extraction (n_output small,
    # unrolled statically); padding index == n_e marks "no candidate".
    ranked = jnp.where(sel, s, NEG)
    for k in range(n_output):
        row_max = jnp.max(ranked, axis=1, keepdims=True)                     # (N_H, 1)
        hit = (ranked == row_max) & (row_max > NEG)
        pos = jnp.min(jnp.where(hit, col_pos, float(n_e)), axis=1,
                      keepdims=True)                                         # (N_H, 1)
        topk_ref[:, k:k + 1] = pos.astype(jnp.int32)
        ranked = jnp.where(col_pos == pos, NEG, ranked)


def _vmem_limit_bytes():
    """~5/8 of per-core VMEM: ~40 MiB on v7x (64 MiB/TC), ~80 MiB on v5e/v6e."""
    try:
        cap = int(pltpu.get_tpu_info().vmem_capacity_bytes)
    except Exception:
        cap = 64 * 1024 * 1024  # assume the smallest per-core VMEM (v7x)
    return min(cap * 5 // 8, 96 * 1024 * 1024)


@functools.partial(jax.jit, static_argnames=("n_output", "single_buffer"))
def _output_layer_jit(hs, w, es, mask, *, n_output, single_buffer):
    n_h, d = hs.shape
    n_e = es.shape[0]

    def spec(shape):
        kwargs = {"pipeline_mode": pl.Buffered(1)} if single_buffer else {}
        return pl.BlockSpec(shape, lambda i: (0,) * len(shape), **kwargs)

    logits, top_idx, counts = pl.pallas_call(
        functools.partial(_output_layer_kernel, n_output=n_output),
        grid=(1,),
        in_specs=[spec((n_h, d)), spec((d, d)), spec((n_e, d)), spec((n_h, n_e))],
        out_specs=[spec((n_h, n_e)), spec((n_h, n_output)), spec((n_h, 1))],
        out_shape=(
            jax.ShapeDtypeStruct((n_h, n_e), jnp.float32),   # logits
            jax.ShapeDtypeStruct((n_h, n_output), jnp.int32),  # top-k indices
            jax.ShapeDtypeStruct((n_h, 1), jnp.int32),       # candidate counts
        ),
        compiler_params=pltpu.CompilerParams(
            dimension_semantics=("arbitrary",),
            vmem_limit_bytes=_vmem_limit_bytes(),
        ),
    )(hs, w, es, mask)

    # expansion_scores[i] = logits[:, expansion_i].T : gather only the k chosen
    # columns per row — no full logits.T materialization.
    safe_idx = jnp.minimum(top_idx, n_e - 1)          # clamp "no candidate" pad
    gathered = jnp.take(logits, safe_idx, axis=1)     # (N_H, N_H, k)
    gathered = jnp.transpose(gathered, (1, 2, 0))     # (N_H, k, N_H)
    return logits, top_idx, counts, gathered


_SINGLE_BUFFER_OK = True


def _run_core(hs, w, es, mask, n_output):
    """Fused forward; falls back to default double-buffering if this jax build
    rejects pipeline_mode=pl.Buffered(1)."""
    global _SINGLE_BUFFER_OK
    if _SINGLE_BUFFER_OK:
        try:
            return _output_layer_jit(hs, w, es, mask,
                                     n_output=n_output, single_buffer=True)
        except Exception:
            _SINGLE_BUFFER_OK = False
    return _output_layer_jit(hs, w, es, mask,
                             n_output=n_output, single_buffer=False)


def output_layer_forward(hs, w, es, mask, n_output):
    """Deterministic (stochastic=False) OutputLayer.forward.

    Returns (expansions, expansion_scores): lists of np arrays, row i holding
    up to n_output expansion column indices and the (k, N_H) logits columns.
    """
    _, top_idx, counts, gathered = _run_core(hs, w, es, mask, n_output)
    top_idx = np.asarray(top_idx)     # (N_H, n_output) int32  -- tiny D2H
    counts = np.asarray(counts)       # (N_H, 1) int32
    gathered = np.asarray(gathered)   # (N_H, n_output, N_H)

    expansions, expansion_scores = [], []
    for i in range(top_idx.shape[0]):
        k = int(min(n_output, counts[i, 0]))
        expansions.append(top_idx[i, :k])
        expansion_scores.append(gathered[i, :k, :])   # == logits[:, exp].T
    return expansions, expansion_scores


def _reference_logits(hs, w, es):
    """Pure-JAX reference of the logits path (mirrors the kernel's bf16 matmul)."""
    proj = jnp.dot(hs.astype(jnp.bfloat16), w,
                   preferred_element_type=jnp.float32).astype(jnp.bfloat16)
    raw = jnp.dot(proj, es.T, preferred_element_type=jnp.float32)
    mu = jnp.mean(raw)
    std = jnp.sqrt(jnp.var(raw, ddof=1) + 1e-12)
    s = (raw - mu) / std
    return jax.nn.log_softmax(s, axis=-1) + jax.nn.log_softmax(s, axis=0)


if __name__ == "__main__":
    # Small, lane-friendly demo shapes: N_H multiple of 8, N_E / D multiples of 128.
    N_H, N_E, DIM, N_OUTPUT = 16, 256, 128, 4

    key = jax.random.PRNGKey(0)
    k_hs, k_es, k_w, k_m = jax.random.split(key, 4)

    hs = jax.random.normal(k_hs, (N_H, DIM), dtype=jnp.float32)
    # Static operands stored bf16 in HBM at init time (perf feedback).
    es = jax.random.normal(k_es, (N_E, DIM), dtype=jnp.float32).astype(jnp.bfloat16)
    w = (jax.random.normal(k_w, (DIM, DIM), dtype=jnp.float32)
         / np.sqrt(DIM)).astype(jnp.bfloat16)
    mask = (jax.random.uniform(k_m, (N_H, N_E)) > 0.3).astype(jnp.bfloat16)

    # Run the fused kernel once and block on all results.
    logits, top_idx, counts, gathered = jax.block_until_ready(
        _run_core(hs, w, es, mask, N_OUTPUT))
    assert logits.shape == (N_H, N_E)
    assert top_idx.shape == (N_H, N_OUTPUT)

    # --- correctness: logits vs pure-JAX reference ---------------------------
    ref_logits = jax.block_until_ready(_reference_logits(hs, w, es))
    np.testing.assert_allclose(np.asarray(logits), np.asarray(ref_logits),
                               rtol=2e-3, atol=2e-3)

    # --- structural sanity of the fused selection ----------------------------
    expansions, expansion_scores = output_layer_forward(hs, w, es, mask, N_OUTPUT)
    assert len(expansions) == N_H and len(expansion_scores) == N_H
    mask_np = np.asarray(mask.astype(jnp.float32)) > 0
    counts_np = np.asarray(counts)[:, 0]
    logits_np = np.asarray(logits)
    for i, (exp, sc) in enumerate(zip(expansions, expansion_scores)):
        assert exp.shape[0] == min(N_OUTPUT, int(counts_np[i]))
        assert sc.shape == (exp.shape[0], N_H)
        if exp.size:
            assert np.all(mask_np[i, exp])                    # masked-in columns only
            assert np.array_equal(sc, logits_np[:, exp].T)    # correct logits columns

    print("KERNEL_OK")
</pallas_src>

<mosaic_0001>
module attributes {stable_mosaic.version = 11 : i64} {
  func.func @_output_layer_kernel(%arg0: i32, %arg1: memref<16x128xf32, #tpu.memory_space<vmem>>, %arg2: memref<128x128xbf16, #tpu.memory_space<vmem>>, %arg3: memref<256x128xbf16, #tpu.memory_space<vmem>>, %arg4: memref<16x256xbf16, #tpu.memory_space<vmem>>, %arg5: memref<16x256xf32, #tpu.memory_space<vmem>>, %arg6: memref<16x4xi32, #tpu.memory_space<vmem>>, %arg7: memref<16x1xi32, #tpu.memory_space<vmem>>) attributes {dimension_semantics = [#tpu.dimension_semantics<arbitrary>], iteration_bounds = array<i64: 1>, scalar_prefetch = 0 : i64, scratch_operands = 0 : i64, tpu.core_type = #tpu.core_type<tc>, window_params = [{pipeline_mode = #tpu.pipeline_mode<synchronous>, transform_indices = @transform_0, window_bounds = array<i64: 16, 128>}, {pipeline_mode = #tpu.pipeline_mode<synchronous>, transform_indices = @transform_1, window_bounds = array<i64: 128, 128>}, {pipeline_mode = #tpu.pipeline_mode<synchronous>, transform_indices = @transform_2, window_bounds = array<i64: 256, 128>}, {pipeline_mode = #tpu.pipeline_mode<synchronous>, transform_indices = @transform_3, window_bounds = array<i64: 16, 256>}, {pipeline_mode = #tpu.pipeline_mode<synchronous>, transform_indices = @transform_4, window_bounds = array<i64: 16, 256>}, {pipeline_mode = #tpu.pipeline_mode<synchronous>, transform_indices = @transform_5, window_bounds = array<i64: 16, 4>}, {pipeline_mode = #tpu.pipeline_mode<synchronous>, transform_indices = @transform_6, window_bounds = array<i64: 16, 1>}]} {
    %c0 = arith.constant 0 : index
    %c0_0 = arith.constant 0 : index
    %0 = vector.load %arg1[%c0, %c0_0] : memref<16x128xf32, #tpu.memory_space<vmem>>, vector<16x128xf32>
    %1 = arith.truncf %0 : vector<16x128xf32> to vector<16x128xbf16>
    %c0_1 = arith.constant 0 : index
    %c0_2 = arith.constant 0 : index
    %2 = vector.load %arg2[%c0_1, %c0_2] : memref<128x128xbf16, #tpu.memory_space<vmem>>, vector<128x128xbf16>
    %c0_3 = arith.constant 0 : index
    %c0_4 = arith.constant 0 : index
    %3 = vector.load %arg3[%c0_3, %c0_4] : memref<256x128xbf16, #tpu.memory_space<vmem>>, vector<256x128xbf16>
    %c0_5 = arith.constant 0 : index
    %c0_6 = arith.constant 0 : index
    %4 = vector.load %arg4[%c0_5, %c0_6] : memref<16x256xbf16, #tpu.memory_space<vmem>>, vector<16x256xbf16>
    %cst = arith.constant 0.000000e+00 : bf16
    %5 = vector.broadcast %cst : bf16 to vector<16x256xbf16>
    %6 = arith.cmpf ogt, %4, %5 : vector<16x256xbf16>
    %cst_7 = arith.constant dense<0.000000e+00> : vector<16x128xf32>
    %7 = tpu.matmul %1, %2, %cst_7 {dimension_numbers = #tpu.dot_dimension_numbers<[1], [0], [0], [1], [0, 0, 1, 1], [], []>} : vector<16x128xbf16>, vector<128x128xbf16>, vector<16x128xf32> -> vector<16x128xf32>
    %8 = arith.truncf %7 : vector<16x128xf32> to vector<16x128xbf16>
    %cst_8 = arith.constant dense<0.000000e+00> : vector<16x256xf32>
    %9 = tpu.matmul %8, %3, %cst_8 {dimension_numbers = #tpu.dot_dimension_numbers<[1], [1], [0], [0], [0, 0, 1, 0], [], []>} : vector<16x128xbf16>, vector<256x128xbf16>, vector<16x256xf32> -> vector<16x256xf32>
    %10 = vector.shape_cast %9 : vector<16x256xf32> to vector<1x16x256xf32>
    %cst_9 = arith.constant dense<0.000000e+00> : vector<1xf32>
    %11 = vector.multi_reduction <add>, %10, %cst_9 [1, 2] : vector<1x16x256xf32> to vector<1xf32>
    %12 = vector.shape_cast %11 : vector<1xf32> to vector<1x1x1xf32>
    %13 = vector.extract %12[0, 0, 0] : f32 from vector<1x1x1xf32>
    %cst_10 = arith.constant 2.44140625E-4 : f32
    %14 = arith.mulf %13, %cst_10 : f32
    %15 = vector.broadcast %14 : f32 to vector<16x256xf32>
    %16 = arith.subf %9, %15 : vector<16x256xf32>
    %17 = arith.mulf %16, %16 : vector<16x256xf32>
    %18 = vector.shape_cast %17 : vector<16x256xf32> to vector<1x16x256xf32>
    %cst_11 = arith.constant dense<0.000000e+00> : vector<1xf32>
    %19 = vector.multi_reduction <add>, %18, %cst_11 [1, 2] : vector<1x16x256xf32> to vector<1xf32>
    %20 = vector.shape_cast %19 : vector<1xf32> to vector<1x1x1xf32>
    %21 = vector.extract %20[0, 0, 0] : f32 from vector<1x1x1xf32>
    %cst_12 = arith.constant 2.44200259E-4 : f32
    %22 = arith.mulf %21, %cst_12 : f32
    %cst_13 = arith.constant 9.99999996E-13 : f32
    %23 = arith.addf %22, %cst_13 : f32
    %24 = math.rsqrt %23 : f32
    %25 = vector.broadcast %24 : f32 to vector<16x256xf32>
    %26 = arith.mulf %16, %25 : vector<16x256xf32>
    %cst_14 = arith.constant dense<0xFF800000> : vector<256xf32>
    %27 = vector.multi_reduction <maximumf>, %26, %cst_14 [0] : vector<16x256xf32> to vector<256xf32>
    %28 = vector.shape_cast %27 : vector<256xf32> to vector<1x256xf32>
    %29 = vector.broadcast %28 : vector<1x256xf32> to vector<16x256xf32>
    %30 = arith.subf %26, %29 : vector<16x256xf32>
    %31 = vector.broadcast %28 : vector<1x256xf32> to vector<16x256xf32>
    %32 = arith.subf %26, %31 : vector<16x256xf32>
    %33 = math.exp %32 : vector<16x256xf32>
    %cst_15 = arith.constant dense<0.000000e+00> : vector<256xf32>
    %34 = vector.multi_reduction <add>, %33, %cst_15 [0] : vector<16x256xf32> to vector<256xf32>
    %35 = vector.shape_cast %34 : vector<256xf32> to vector<1x256xf32>
    %36 = math.log %35 : vector<1x256xf32>
    %37 = vector.broadcast %36 : vector<1x256xf32> to vector<16x256xf32>
    %38 = arith.subf %30, %37 : vector<16x256xf32>
    %cst_16 = arith.constant dense<0xFF800000> : vector<16xf32>
    %39 = vector.multi_reduction <maximumf>, %26, %cst_16 [1] : vector<16x256xf32> to vector<16xf32>
    %40 = vector.shape_cast %39 : vector<16xf32> to vector<16x1xf32>
    %41 = vector.broadcast %40 : vector<16x1xf32> to vector<16x256xf32>
    %42 = arith.subf %26, %41 : vector<16x256xf32>
    %43 = vector.broadcast %40 : vector<16x1xf32> to vector<16x256xf32>
    %44 = arith.subf %26, %43 : vector<16x256xf32>
    %45 = math.exp %44 : vector<16x256xf32>
    %cst_17 = arith.constant dense<0.000000e+00> : vector<16xf32>
    %46 = vector.multi_reduction <add>, %45, %cst_17 [1] : vector<16x256xf32> to vector<16xf32>
    %47 = vector.shape_cast %46 : vector<16xf32> to vector<16x1xf32>
    %48 = math.log %47 : vector<16x1xf32>
    %49 = vector.broadcast %48 : vector<16x1xf32> to vector<16x256xf32>
    %50 = arith.subf %42, %49 : vector<16x256xf32>
    %51 = arith.addf %50, %38 : vector<16x256xf32>
    %c0_18 = arith.constant 0 : index
    %c0_19 = arith.constant 0 : index
    %52 = vector.load %arg5[%c0_18, %c0_19] : memref<16x256xf32, #tpu.memory_space<vmem>>, vector<16x256xf32>
    tpu.vector_store %arg5[%c0_18, %c0_19], %51 {strides = array<i32>} : memref<16x256xf32, #tpu.memory_space<vmem>>, vector<16x256xf32>,
    %53 = tpu.iota {dimensions = array<i32: 0>} : vector<16x256xi32>
    %54 = arith.sitofp %53 : vector<16x256xi32> to vector<16x256xf32>
    %55 = tpu.iota {dimensions = array<i32: 1>} : vector<16x256xi32>
    %56 = arith.sitofp %55 : vector<16x256xi32> to vector<16x256xf32>
    %cst_20 = arith.constant -1.000000e+30 : f32
    %57 = vector.broadcast %cst_20 : f32 to vector<16x256xf32>
    %58 = arith.select %6, %26, %57 : vector<16x256xi1>, vector<16x256xf32>
    %cst_21 = arith.constant dense<0xFF800000> : vector<256xf32>
    %59 = vector.multi_reduction <maximumf>, %58, %cst_21 [0] : vector<16x256xf32> to vector<256xf32>
    %60 = vector.shape_cast %59 : vector<256xf32> to vector<1x256xf32>
    %61 = vector.broadcast %60 : vector<1x256xf32> to vector<16x256xf32>
    %62 = arith.cmpf oeq, %58, %61 : vector<16x256xf32>
    %cst_22 = arith.constant 1.600000e+01 : f32
    %63 = vector.broadcast %cst_22 : f32 to vector<16x256xf32>
    %64 = arith.select %62, %54, %63 : vector<16x256xi1>, vector<16x256xf32>
    %cst_23 = arith.constant dense<0x7F800000> : vector<256xf32>
    %65 = vector.multi_reduction <minimumf>, %64, %cst_23 [0] : vector<16x256xf32> to vector<256xf32>
    %66 = vector.shape_cast %65 : vector<256xf32> to vector<1x256xf32>
    %67 = vector.broadcast %66 : vector<1x256xf32> to vector<16x256xf32>
    %68 = arith.cmpf oeq, %54, %67 : vector<16x256xf32>
    %69 = arith.andi %6, %68 : vector<16x256xi1>
    %70 = arith.extui %69 : vector<16x256xi1> to vector<16x256xi32>
    %71 = arith.sitofp %70 : vector<16x256xi32> to vector<16x256xf32>
    %cst_24 = arith.constant dense<0.000000e+00> : vector<16xf32>
    %72 = vector.multi_reduction <add>, %71, %cst_24 [1] : vector<16x256xf32> to vector<16xf32>
    %73 = vector.shape_cast %72 : vector<16xf32> to vector<16x1xf32>
    %74 = arith.fptosi %73 : vector<16x1xf32> to vector<16x1xi32>
    %c0_25 = arith.constant 0 : index
    %c0_26 = arith.constant 0 : index
    %75 = vector.load %arg7[%c0_25, %c0_26] : memref<16x1xi32, #tpu.memory_space<vmem>>, vector<16x1xi32>
    tpu.vector_store %arg7[%c0_25, %c0_26], %74 {strides = array<i32>} : memref<16x1xi32, #tpu.memory_space<vmem>>, vector<16x1xi32>,
    %cst_27 = arith.constant -1.000000e+30 : f32
    %76 = vector.broadcast %cst_27 : f32 to vector<16x256xf32>
    %77 = arith.select %69, %26, %76 : vector<16x256xi1>, vector<16x256xf32>
    %cst_28 = arith.constant dense<0xFF800000> : vector<16xf32>
    %78 = vector.multi_reduction <maximumf>, %77, %cst_28 [1] : vector<16x256xf32> to vector<16xf32>
    %79 = vector.shape_cast %78 : vector<16xf32> to vector<16x1xf32>
    %80 = vector.broadcast %79 : vector<16x1xf32> to vector<16x256xf32>
    %81 = arith.cmpf oeq, %77, %80 : vector<16x256xf32>
    %cst_29 = arith.constant -1.000000e+30 : f32
    %82 = vector.broadcast %cst_29 : f32 to vector<16x1xf32>
    %83 = arith.cmpf ogt, %79, %82 : vector<16x1xf32>
    %84 = vector.broadcast %83 : vector<16x1xi1> to vector<16x256xi1>
    %85 = arith.andi %81, %84 : vector<16x256xi1>
    %cst_30 = arith.constant 2.560000e+02 : f32
    %86 = vector.broadcast %cst_30 : f32 to vector<16x256xf32>
    %87 = arith.select %85, %56, %86 : vector<16x256xi1>, vector<16x256xf32>
    %cst_31 = arith.constant dense<0x7F800000> : vector<16xf32>
    %88 = vector.multi_reduction <minimumf>, %87, %cst_31 [1] : vector<16x256xf32> to vector<16xf32>
    %89 = vector.shape_cast %88 : vector<16xf32> to vector<16x1xf32>
    %90 = arith.fptosi %89 : vector<16x1xf32> to vector<16x1xi32>
    %c0_32 = arith.constant 0 : index
    %c0_33 = arith.constant 0 : index
    %91 = vector.load %arg6[%c0_32, %c0_33] : memref<16x4xi32, #tpu.memory_space<vmem>>, vector<16x1xi32>
    tpu.vector_store %arg6[%c0_32, %c0_33], %90 {strides = array<i32>} : memref<16x4xi32, #tpu.memory_space<vmem>>, vector<16x1xi32>,
    %92 = vector.broadcast %89 : vector<16x1xf32> to vector<16x256xf32>
    %93 = arith.cmpf oeq, %56, %92 : vector<16x256xf32>
    %cst_34 = arith.constant -1.000000e+30 : f32
    %94 = vector.broadcast %cst_34 : f32 to vector<16x256xf32>
    %95 = arith.select %93, %94, %77 : vector<16x256xi1>, vector<16x256xf32>
    %cst_35 = arith.constant dense<0xFF800000> : vector<16xf32>
    %96 = vector.multi_reduction <maximumf>, %95, %cst_35 [1] : vector<16x256xf32> to vector<16xf32>
    %97 = vector.shape_cast %96 : vector<16xf32> to vector<16x1xf32>
    %98 = vector.broadcast %97 : vector<16x1xf32> to vector<16x256xf32>
    %99 = arith.cmpf oeq, %95, %98 : vector<16x256xf32>
    %cst_36 = arith.constant -1.000000e+30 : f32
    %100 = vector.broadcast %cst_36 : f32 to vector<16x1xf32>
    %101 = arith.cmpf ogt, %97, %100 : vector<16x1xf32>
    %102 = vector.broadcast %101 : vector<16x1xi1> to vector<16x256xi1>
    %103 = arith.andi %99, %102 : vector<16x256xi1>
    %cst_37 = arith.constant 2.560000e+02 : f32
    %104 = vector.broadcast %cst_37 : f32 to vector<16x256xf32>
    %105 = arith.select %103, %56, %104 : vector<16x256xi1>, vector<16x256xf32>
    %cst_38 = arith.constant dense<0x7F800000> : vector<16xf32>
    %106 = vector.multi_reduction <minimumf>, %105, %cst_38 [1] : vector<16x256xf32> to vector<16xf32>
    %107 = vector.shape_cast %106 : vector<16xf32> to vector<16x1xf32>
    %108 = arith.fptosi %107 : vector<16x1xf32> to vector<16x1xi32>
    %c0_39 = arith.constant 0 : index
    %c1 = arith.constant 1 : index
    %109 = vector.load %arg6[%c0_39, %c1] : memref<16x4xi32, #tpu.memory_space<vmem>>, vector<16x1xi32>
    tpu.vector_store %arg6[%c0_39, %c1], %108 {strides = array<i32>} : memref<16x4xi32, #tpu.memory_space<vmem>>, vector<16x1xi32>,
    %110 = vector.broadcast %107 : vector<16x1xf32> to vector<16x256xf32>
    %111 = arith.cmpf oeq, %56, %110 : vector<16x256xf32>
    %cst_40 = arith.constant -1.000000e+30 : f32
    %112 = vector.broadcast %cst_40 : f32 to vector<16x256xf32>
    %113 = arith.select %111, %112, %95 : vector<16x256xi1>, vector<16x256xf32>
    %cst_41 = arith.constant dense<0xFF800000> : vector<16xf32>
    %114 = vector.multi_reduction <maximumf>, %113, %cst_41 [1] : vector<16x256xf32> to vector<16xf32>
    %115 = vector.shape_cast %114 : vector<16xf32> to vector<16x1xf32>
    %116 = vector.broadcast %115 : vector<16x1xf32> to vector<16x256xf32>
    %117 = arith.cmpf oeq, %113, %116 : vector<16x256xf32>
    %cst_42 = arith.constant -1.000000e+30 : f32
    %118 = vector.broadcast %cst_42 : f32 to vector<16x1xf32>
    %119 = arith.cmpf ogt, %115, %118 : vector<16x1xf32>
    %120 = vector.broadcast %119 : vector<16x1xi1> to vector<16x256xi1>
    %121 = arith.andi %117, %120 : vector<16x256xi1>
    %cst_43 = arith.constant 2.560000e+02 : f32
    %122 = vector.broadcast %cst_43 : f32 to vector<16x256xf32>
    %123 = arith.select %121, %56, %122 : vector<16x256xi1>, vector<16x256xf32>
    %cst_44 = arith.constant dense<0x7F800000> : vector<16xf32>
    %124 = vector.multi_reduction <minimumf>, %123, %cst_44 [1] : vector<16x256xf32> to vector<16xf32>
    %125 = vector.shape_cast %124 : vector<16xf32> to vector<16x1xf32>
    %126 = arith.fptosi %125 : vector<16x1xf32> to vector<16x1xi32>
    %c0_45 = arith.constant 0 : index
    %c2 = arith.constant 2 : index
    %127 = vector.load %arg6[%c0_45, %c2] : memref<16x4xi32, #tpu.memory_space<vmem>>, vector<16x1xi32>
    tpu.vector_store %arg6[%c0_45, %c2], %126 {strides = array<i32>} : memref<16x4xi32, #tpu.memory_space<vmem>>, vector<16x1xi32>,
    %128 = vector.broadcast %125 : vector<16x1xf32> to vector<16x256xf32>
    %129 = arith.cmpf oeq, %56, %128 : vector<16x256xf32>
    %cst_46 = arith.constant -1.000000e+30 : f32
    %130 = vector.broadcast %cst_46 : f32 to vector<16x256xf32>
    %131 = arith.select %129, %130, %113 : vector<16x256xi1>, vector<16x256xf32>
    %cst_47 = arith.constant dense<0xFF800000> : vector<16xf32>
    %132 = vector.multi_reduction <maximumf>, %131, %cst_47 [1] : vector<16x256xf32> to vector<16xf32>
    %133 = vector.shape_cast %132 : vector<16xf32> to vector<16x1xf32>
    %134 = vector.broadcast %133 : vector<16x1xf32> to vector<16x256xf32>
    %135 = arith.cmpf oeq, %131, %134 : vector<16x256xf32>
    %cst_48 = arith.constant -1.000000e+30 : f32
    %136 = vector.broadcast %cst_48 : f32 to vector<16x1xf32>
    %137 = arith.cmpf ogt, %133, %136 : vector<16x1xf32>
    %138 = vector.broadcast %137 : vector<16x1xi1> to vector<16x256xi1>
    %139 = arith.andi %135, %138 : vector<16x256xi1>
    %cst_49 = arith.constant 2.560000e+02 : f32
    %140 = vector.broadcast %cst_49 : f32 to vector<16x256xf32>
    %141 = arith.select %139, %56, %140 : vector<16x256xi1>, vector<16x256xf32>
    %cst_50 = arith.constant dense<0x7F800000> : vector<16xf32>
    %142 = vector.multi_reduction <minimumf>, %141, %cst_50 [1] : vector<16x256xf32> to vector<16xf32>
    %143 = vector.shape_cast %142 : vector<16xf32> to vector<16x1xf32>
    %144 = arith.fptosi %143 : vector<16x1xf32> to vector<16x1xi32>
    %c0_51 = arith.constant 0 : index
    %c3 = arith.constant 3 : index
    %145 = vector.load %arg6[%c0_51, %c3] : memref<16x4xi32, #tpu.memory_space<vmem>>, vector<16x1xi32>
    tpu.vector_store %arg6[%c0_51, %c3], %144 {strides = array<i32>} : memref<16x4xi32, #tpu.memory_space<vmem>>, vector<16x1xi32>,
    return
  }
  func.func @transform_0(%arg0: i32) -> (i32, i32) {
    %c0_i32 = arith.constant 0 : i32
    %c0_i32_0 = arith.constant 0 : i32
    %c0_i32_1 = arith.constant 0 : i32
    return %c0_i32, %c0_i32_0 : i32, i32
  }
  func.func @transform_1(%arg0: i32) -> (i32, i32) {
    %c0_i32 = arith.constant 0 : i32
    %c0_i32_0 = arith.constant 0 : i32
    %c0_i32_1 = arith.constant 0 : i32
    return %c0_i32, %c0_i32_0 : i32, i32
  }
  func.func @transform_2(%arg0: i32) -> (i32, i32) {
    %c0_i32 = arith.constant 0 : i32
    %c0_i32_0 = arith.constant 0 : i32
    %c0_i32_1 = arith.constant 0 : i32
    return %c0_i32, %c0_i32_0 : i32, i32
  }
  func.func @transform_3(%arg0: i32) -> (i32, i32) {
    %c0_i32 = arith.constant 0 : i32
    %c0_i32_0 = arith.constant 0 : i32
    %c0_i32_1 = arith.constant 0 : i32
    return %c0_i32, %c0_i32_0 : i32, i32
  }
  func.func @transform_4(%arg0: i32) -> (i32, i32) {
    %c0_i32 = arith.constant 0 : i32
    %c0_i32_0 = arith.constant 0 : i32
    %c0_i32_1 = arith.constant 0 : i32
    return %c0_i32, %c0_i32_0 : i32, i32
  }
  func.func @transform_5(%arg0: i32) -> (i32, i32) {
    %c0_i32 = arith.constant 0 : i32
    %c0_i32_0 = arith.constant 0 : i32
    %c0_i32_1 = arith.constant 0 : i32
    return %c0_i32, %c0_i32_0 : i32, i32
  }
  func.func @transform_6(%arg0: i32) -> (i32, i32) {
    %c0_i32 = arith.constant 0 : i32
    %c0_i32_0 = arith.constant 0 : i32
    %c0_i32_1 = arith.constant 0 : i32
    return %c0_i32, %c0_i32_0 : i32, i32
  }
}

module attributes {stable_mosaic.version = 11 : i64} {
  func.func @_output_layer_kernel(%arg0: i32, %arg1: memref<16x128xf32, #tpu.memory_space<vmem>>, %arg2: memref<128x128xbf16, #tpu.memory_space<vmem>>, %arg3: memref<256x128xbf16, #tpu.memory_space<vmem>>, %arg4: memref<16x256xbf16, #tpu.memory_space<vmem>>, %arg5: memref<16x256xf32, #tpu.memory_space<vmem>>, %arg6: memref<16x4xi32, #tpu.memory_space<vmem>>, %arg7: memref<16x1xi32, #tpu.memory_space<vmem>>) attributes {dimension_semantics = [#tpu.dimension_semantics<arbitrary>], iteration_bounds = array<i64: 1>, scalar_prefetch = 0 : i64, scratch_operands = 0 : i64, tpu.core_type = #tpu.core_type<tc>, window_params = [{pipeline_mode = #tpu.pipeline_mode<synchronous>, transform_indices = @transform_0, window_bounds = array<i64: 16, 128>}, {pipeline_mode = #tpu.pipeline_mode<synchronous>, transform_indices = @transform_1, window_bounds = array<i64: 128, 128>}, {pipeline_mode = #tpu.pipeline_mode<synchronous>, transform_indices = @transform_2, window_bounds = array<i64: 256, 128>}, {pipeline_mode = #tpu.pipeline_mode<synchronous>, transform_indices = @transform_3, window_bounds = array<i64: 16, 256>}, {pipeline_mode = #tpu.pipeline_mode<synchronous>, transform_indices = @transform_4, window_bounds = array<i64: 16, 256>}, {pipeline_mode = #tpu.pipeline_mode<synchronous>, transform_indices = @transform_5, window_bounds = array<i64: 16, 4>}, {pipeline_mode = #tpu.pipeline_mode<synchronous>, transform_indices = @transform_6, window_bounds = array<i64: 16, 1>}]} {
    %c0 = arith.constant 0 : index
    %c0_0 = arith.constant 0 : index
    %0 = vector.load %arg1[%c0, %c0_0] : memref<16x128xf32, #tpu.memory_space<vmem>>, vector<16x128xf32>
    %1 = arith.truncf %0 : vector<16x128xf32> to vector<16x128xbf16>
    %c0_1 = arith.constant 0 : index
    %c0_2 = arith.constant 0 : index
    %2 = vector.load %arg2[%c0_1, %c0_2] : memref<128x128xbf16, #tpu.memory_space<vmem>>, vector<128x128xbf16>
    %c0_3 = arith.constant 0 : index
    %c0_4 = arith.constant 0 : index
    %3 = vector.load %arg3[%c0_3, %c0_4] : memref<256x128xbf16, #tpu.memory_space<vmem>>, vector<256x128xbf16>
    %c0_5 = arith.constant 0 : index
    %c0_6 = arith.constant 0 : index
    %4 = vector.load %arg4[%c0_5, %c0_6] : memref<16x256xbf16, #tpu.memory_space<vmem>>, vector<16x256xbf16>
    %cst = arith.constant 0.000000e+00 : bf16
    %5 = vector.broadcast %cst : bf16 to vector<16x256xbf16>
    %6 = arith.cmpf ogt, %4, %5 : vector<16x256xbf16>
    %cst_7 = arith.constant dense<0.000000e+00> : vector<16x128xf32>
    %7 = tpu.matmul %1, %2, %cst_7 {dimension_numbers = #tpu.dot_dimension_numbers<[1], [0], [0], [1], [0, 0, 1, 1], [], []>} : vector<16x128xbf16>, vector<128x128xbf16>, vector<16x128xf32> -> vector<16x128xf32>
    %8 = arith.truncf %7 : vector<16x128xf32> to vector<16x128xbf16>
    %cst_8 = arith.constant dense<0.000000e+00> : vector<16x256xf32>
    %9 = tpu.matmul %8, %3, %cst_8 {dimension_numbers = #tpu.dot_dimension_numbers<[1], [1], [0], [0], [0, 0, 1, 0], [], []>} : vector<16x128xbf16>, vector<256x128xbf16>, vector<16x256xf32> -> vector<16x256xf32>
    %10 = vector.shape_cast %9 : vector<16x256xf32> to vector<1x16x256xf32>
    %cst_9 = arith.constant dense<0.000000e+00> : vector<1xf32>
    %11 = vector.multi_reduction <add>, %10, %cst_9 [1, 2] : vector<1x16x256xf32> to vector<1xf32>
    %12 = vector.shape_cast %11 : vector<1xf32> to vector<1x1x1xf32>
    %13 = vector.extract %12[0, 0, 0] : f32 from vector<1x1x1xf32>
    %cst_10 = arith.constant 2.44140625E-4 : f32
    %14 = arith.mulf %13, %cst_10 : f32
    %15 = vector.broadcast %14 : f32 to vector<16x256xf32>
    %16 = arith.subf %9, %15 : vector<16x256xf32>
    %17 = arith.mulf %16, %16 : vector<16x256xf32>
    %18 = vector.shape_cast %17 : vector<16x256xf32> to vector<1x16x256xf32>
    %cst_11 = arith.constant dense<0.000000e+00> : vector<1xf32>
    %19 = vector.multi_reduction <add>, %18, %cst_11 [1, 2] : vector<1x16x256xf32> to vector<1xf32>
    %20 = vector.shape_cast %19 : vector<1xf32> to vector<1x1x1xf32>
    %21 = vector.extract %20[0, 0, 0] : f32 from vector<1x1x1xf32>
    %cst_12 = arith.constant 2.44200259E-4 : f32
    %22 = arith.mulf %21, %cst_12 : f32
    %cst_13 = arith.constant 9.99999996E-13 : f32
    %23 = arith.addf %22, %cst_13 : f32
    %24 = math.rsqrt %23 : f32
    %25 = vector.broadcast %24 : f32 to vector<16x256xf32>
    %26 = arith.mulf %16, %25 : vector<16x256xf32>
    %cst_14 = arith.constant dense<0xFF800000> : vector<256xf32>
    %27 = vector.multi_reduction <maximumf>, %26, %cst_14 [0] : vector<16x256xf32> to vector<256xf32>
    %28 = vector.shape_cast %27 : vector<256xf32> to vector<1x256xf32>
    %29 = vector.broadcast %28 : vector<1x256xf32> to vector<16x256xf32>
    %30 = arith.subf %26, %29 : vector<16x256xf32>
    %31 = vector.broadcast %28 : vector<1x256xf32> to vector<16x256xf32>
    %32 = arith.subf %26, %31 : vector<16x256xf32>
    %33 = math.exp %32 : vector<16x256xf32>
    %cst_15 = arith.constant dense<0.000000e+00> : vector<256xf32>
    %34 = vector.multi_reduction <add>, %33, %cst_15 [0] : vector<16x256xf32> to vector<256xf32>
    %35 = vector.shape_cast %34 : vector<256xf32> to vector<1x256xf32>
    %36 = math.log %35 : vector<1x256xf32>
    %37 = vector.broadcast %36 : vector<1x256xf32> to vector<16x256xf32>
    %38 = arith.subf %30, %37 : vector<16x256xf32>
    %cst_16 = arith.constant dense<0xFF800000> : vector<16xf32>
    %39 = vector.multi_reduction <maximumf>, %26, %cst_16 [1] : vector<16x256xf32> to vector<16xf32>
    %40 = vector.shape_cast %39 : vector<16xf32> to vector<16x1xf32>
    %41 = vector.broadcast %40 : vector<16x1xf32> to vector<16x256xf32>
    %42 = arith.subf %26, %41 : vector<16x256xf32>
    %43 = vector.broadcast %40 : vector<16x1xf32> to vector<16x256xf32>
    %44 = arith.subf %26, %43 : vector<16x256xf32>
    %45 = math.exp %44 : vector<16x256xf32>
    %cst_17 = arith.constant dense<0.000000e+00> : vector<16xf32>
    %46 = vector.multi_reduction <add>, %45, %cst_17 [1] : vector<16x256xf32> to vector<16xf32>
    %47 = vector.shape_cast %46 : vector<16xf32> to vector<16x1xf32>
    %48 = math.log %47 : vector<16x1xf32>
    %49 = vector.broadcast %48 : vector<16x1xf32> to vector<16x256xf32>
    %50 = arith.subf %42, %49 : vector<16x256xf32>
    %51 = arith.addf %50, %38 : vector<16x256xf32>
    %c0_18 = arith.constant 0 : index
    %c0_19 = arith.constant 0 : index
    %52 = vector.load %arg5[%c0_18, %c0_19] : memref<16x256xf32, #tpu.memory_space<vmem>>, vector<16x256xf32>
    tpu.vector_store %arg5[%c0_18, %c0_19], %51 {strides = array<i32>} : memref<16x256xf32, #tpu.memory_space<vmem>>, vector<16x256xf32>,
    %53 = tpu.iota {dimensions = array<i32: 0>} : vector<16x256xi32>
    %54 = arith.sitofp %53 : vector<16x256xi32> to vector<16x256xf32>
    %55 = tpu.iota {dimensions = array<i32: 1>} : vector<16x256xi32>
    %56 = arith.sitofp %55 : vector<16x256xi32> to vector<16x256xf32>
    %cst_20 = arith.constant -1.000000e+30 : f32
    %57 = vector.broadcast %cst_20 : f32 to vector<16x256xf32>
    %58 = arith.select %6, %26, %57 : vector<16x256xi1>, vector<16x256xf32>
    %cst_21 = arith.constant dense<0xFF800000> : vector<256xf32>
    %59 = vector.multi_reduction <maximumf>, %58, %cst_21 [0] : vector<16x256xf32> to vector<256xf32>
    %60 = vector.shape_cast %59 : vector<256xf32> to vector<1x256xf32>
    %61 = vector.broadcast %60 : vector<1x256xf32> to vector<16x256xf32>
    %62 = arith.cmpf oeq, %58, %61 : vector<16x256xf32>
    %cst_22 = arith.constant 1.600000e+01 : f32
    %63 = vector.broadcast %cst_22 : f32 to vector<16x256xf32>
    %64 = arith.select %62, %54, %63 : vector<16x256xi1>, vector<16x256xf32>
    %cst_23 = arith.constant dense<0x7F800000> : vector<256xf32>
    %65 = vector.multi_reduction <minimumf>, %64, %cst_23 [0] : vector<16x256xf32> to vector<256xf32>
    %66 = vector.shape_cast %65 : vector<256xf32> to vector<1x256xf32>
    %67 = vector.broadcast %66 : vector<1x256xf32> to vector<16x256xf32>
    %68 = arith.cmpf oeq, %54, %67 : vector<16x256xf32>
    %69 = arith.andi %6, %68 : vector<16x256xi1>
    %70 = arith.extui %69 : vector<16x256xi1> to vector<16x256xi32>
    %71 = arith.sitofp %70 : vector<16x256xi32> to vector<16x256xf32>
    %cst_24 = arith.constant dense<0.000000e+00> : vector<16xf32>
    %72 = vector.multi_reduction <add>, %71, %cst_24 [1] : vector<16x256xf32> to vector<16xf32>
    %73 = vector.shape_cast %72 : vector<16xf32> to vector<16x1xf32>
    %74 = arith.fptosi %73 : vector<16x1xf32> to vector<16x1xi32>
    %c0_25 = arith.constant 0 : index
    %c0_26 = arith.constant 0 : index
    %75 = vector.load %arg7[%c0_25, %c0_26] : memref<16x1xi32, #tpu.memory_space<vmem>>, vector<16x1xi32>
    tpu.vector_store %arg7[%c0_25, %c0_26], %74 {strides = array<i32>} : memref<16x1xi32, #tpu.memory_space<vmem>>, vector<16x1xi32>,
    %cst_27 = arith.constant -1.000000e+30 : f32
    %76 = vector.broadcast %cst_27 : f32 to vector<16x256xf32>
    %77 = arith.select %69, %26, %76 : vector<16x256xi1>, vector<16x256xf32>
    %cst_28 = arith.constant dense<0xFF800000> : vector<16xf32>
    %78 = vector.multi_reduction <maximumf>, %77, %cst_28 [1] : vector<16x256xf32> to vector<16xf32>
    %79 = vector.shape_cast %78 : vector<16xf32> to vector<16x1xf32>
    %80 = vector.broadcast %79 : vector<16x1xf32> to vector<16x256xf32>
    %81 = arith.cmpf oeq, %77, %80 : vector<16x256xf32>
    %cst_29 = arith.constant -1.000000e+30 : f32
    %82 = vector.broadcast %cst_29 : f32 to vector<16x1xf32>
    %83 = arith.cmpf ogt, %79, %82 : vector<16x1xf32>
    %84 = vector.broadcast %83 : vector<16x1xi1> to vector<16x256xi1>
    %85 = arith.andi %81, %84 : vector<16x256xi1>
    %cst_30 = arith.constant 2.560000e+02 : f32
    %86 = vector.broadcast %cst_30 : f32 to vector<16x256xf32>
    %87 = arith.select %85, %56, %86 : vector<16x256xi1>, vector<16x256xf32>
    %cst_31 = arith.constant dense<0x7F800000> : vector<16xf32>
    %88 = vector.multi_reduction <minimumf>, %87, %cst_31 [1] : vector<16x256xf32> to vector<16xf32>
    %89 = vector.shape_cast %88 : vector<16xf32> to vector<16x1xf32>
    %90 = arith.fptosi %89 : vector<16x1xf32> to vector<16x1xi32>
    %c0_32 = arith.constant 0 : index
    %c0_33 = arith.constant 0 : index
    %91 = vector.load %arg6[%c0_32, %c0_33] : memref<16x4xi32, #tpu.memory_space<vmem>>, vector<16x1xi32>
    tpu.vector_store %arg6[%c0_32, %c0_33], %90 {strides = array<i32>} : memref<16x4xi32, #tpu.memory_space<vmem>>, vector<16x1xi32>,
    %92 = vector.broadcast %89 : vector<16x1xf32> to vector<16x256xf32>
    %93 = arith.cmpf oeq, %56, %92 : vector<16x256xf32>
    %cst_34 = arith.constant -1.000000e+30 : f32
    %94 = vector.broadcast %cst_34 : f32 to vector<16x256xf32>
    %95 = arith.select %93, %94, %77 : vector<16x256xi1>, vector<16x256xf32>
    %cst_35 = arith.constant dense<0xFF800000> : vector<16xf32>
    %96 = vector.multi_reduction <maximumf>, %95, %cst_35 [1] : vector<16x256xf32> to vector<16xf32>
    %97 = vector.shape_cast %96 : vector<16xf32> to vector<16x1xf32>
    %98 = vector.broadcast %97 : vector<16x1xf32> to vector<16x256xf32>
    %99 = arith.cmpf oeq, %95, %98 : vector<16x256xf32>
    %cst_36 = arith.constant -1.000000e+30 : f32
    %100 = vector.broadcast %cst_36 : f32 to vector<16x1xf32>
    %101 = arith.cmpf ogt, %97, %100 : vector<16x1xf32>
    %102 = vector.broadcast %101 : vector<16x1xi1> to vector<16x256xi1>
    %103 = arith.andi %99, %102 : vector<16x256xi1>
    %cst_37 = arith.constant 2.560000e+02 : f32
    %104 = vector.broadcast %cst_37 : f32 to vector<16x256xf32>
    %105 = arith.select %103, %56, %104 : vector<16x256xi1>, vector<16x256xf32>
    %cst_38 = arith.constant dense<0x7F800000> : vector<16xf32>
    %106 = vector.multi_reduction <minimumf>, %105, %cst_38 [1] : vector<16x256xf32> to vector<16xf32>
    %107 = vector.shape_cast %106 : vector<16xf32> to vector<16x1xf32>
    %108 = arith.fptosi %107 : vector<16x1xf32> to vector<16x1xi32>
    %c0_39 = arith.constant 0 : index
    %c1 = arith.constant 1 : index
    %109 = vector.load %arg6[%c0_39, %c1] : memref<16x4xi32, #tpu.memory_space<vmem>>, vector<16x1xi32>
    tpu.vector_store %arg6[%c0_39, %c1], %108 {strides = array<i32>} : memref<16x4xi32, #tpu.memory_space<vmem>>, vector<16x1xi32>,
    %110 = vector.broadcast %107 : vector<16x1xf32> to vector<16x256xf32>
    %111 = arith.cmpf oeq, %56, %110 : vector<16x256xf32>
    %cst_40 = arith.constant -1.000000e+30 : f32
    %112 = vector.broadcast %cst_40 : f32 to vector<16x256xf32>
    %113 = arith.select %111, %112, %95 : vector<16x256xi1>, vector<16x256xf32>
    %cst_41 = arith.constant dense<0xFF800000> : vector<16xf32>
    %114 = vector.multi_reduction <maximumf>, %113, %cst_41 [1] : vector<16x256xf32> to vector<16xf32>
    %115 = vector.shape_cast %114 : vector<16xf32> to vector<16x1xf32>
    %116 = vector.broadcast %115 : vector<16x1xf32> to vector<16x256xf32>
    %117 = arith.cmpf oeq, %113, %116 : vector<16x256xf32>
    %cst_42 = arith.constant -1.000000e+30 : f32
    %118 = vector.broadcast %cst_42 : f32 to vector<16x1xf32>
    %119 = arith.cmpf ogt, %115, %118 : vector<16x1xf32>
    %120 = vector.broadcast %119 : vector<16x1xi1> to vector<16x256xi1>
    %121 = arith.andi %117, %120 : vector<16x256xi1>
    %cst_43 = arith.constant 2.560000e+02 : f32
    %122 = vector.broadcast %cst_43 : f32 to vector<16x256xf32>
    %123 = arith.select %121, %56, %122 : vector<16x256xi1>, vector<16x256xf32>
    %cst_44 = arith.constant dense<0x7F800000> : vector<16xf32>
    %124 = vector.multi_reduction <minimumf>, %123, %cst_44 [1] : vector<16x256xf32> to vector<16xf32>
    %125 = vector.shape_cast %124 : vector<16xf32> to vector<16x1xf32>
    %126 = arith.fptosi %125 : vector<16x1xf32> to vector<16x1xi32>
    %c0_45 = arith.constant 0 : index
    %c2 = arith.constant 2 : index
    %127 = vector.load %arg6[%c0_45, %c2] : memref<16x4xi32, #tpu.memory_space<vmem>>, vector<16x1xi32>
    tpu.vector_store %arg6[%c0_45, %c2], %126 {strides = array<i32>} : memref<16x4xi32, #tpu.memory_space<vmem>>, vector<16x1xi32>,
    %128 = vector.broadcast %125 : vector<16x1xf32> to vector<16x256xf32>
    %129 = arith.cmpf oeq, %56, %128 : vector<16x256xf32>
    %cst_46 = arith.constant -1.000000e+30 : f32
    %130 = vector.broadcast %cst_46 : f32 to vector<16x256xf32>
    %131 = arith.select %129, %130, %113 : vector<16x256xi1>, vector<16x256xf32>
    %cst_47 = arith.constant dense<0xFF800000> : vector<16xf32>
    %132 = vector.multi_reduction <maximumf>, %131, %cst_47 [1] : vector<16x256xf32> to vector<16xf32>
    %133 = vector.shape_cast %132 : vector<16xf32> to vector<16x1xf32>
    %134 = vector.broadcast %133 : vector<16x1xf32> to vector<16x256xf32>
    %135 = arith.cmpf oeq, %131, %134 : vector<16x256xf32>
    %cst_48 = arith.constant -1.000000e+30 : f32
    %136 = vector.broadcast %cst_48 : f32 to vector<16x1xf32>
    %137 = arith.cmpf ogt, %133, %136 : vector<16x1xf32>
    %138 = vector.broadcast %137 : vector<16x1xi1> to vector<16x256xi1>
    %139 = arith.andi %135, %138 : vector<16x256xi1>
    %cst_49 = arith.constant 2.560000e+02 : f32
    %140 = vector.broadcast %cst_49 : f32 to vector<16x256xf32>
    %141 = arith.select %139, %56, %140 : vector<16x256xi1>, vector<16x256xf32>
    %cst_50 = arith.constant dense<0x7F800000> : vector<16xf32>
    %142 = vector.multi_reduction <minimumf>, %141, %cst_50 [1] : vector<16x256xf32> to vector<16xf32>
    %143 = vector.shape_cast %142 : vector<16xf32> to vector<16x1xf32>
    %144 = arith.fptosi %143 : vector<16x1xf32> to vector<16x1xi32>
    %c0_51 = arith.constant 0 : index
    %c3 = arith.constant 3 : index
    %145 = vector.load %arg6[%c0_51, %c3] : memref<16x4xi32, #tpu.memory_space<vmem>>, vector<16x1xi32>
    tpu.vector_store %arg6[%c0_51, %c3], %144 {strides = array<i32>} : memref<16x4xi32, #tpu.memory_space<vmem>>, vector<16x1xi32>,
    return
  }
  func.func @transform_0(%arg0: i32) -> (i32, i32) {
    %c0_i32 = arith.constant 0 : i32
    %c0_i32_0 = arith.constant 0 : i32
    %c0_i32_1 = arith.constant 0 : i32
    return %c0_i32, %c0_i32_0 : i32, i32
  }
  func.func @transform_1(%arg0: i32) -> (i32, i32) {
    %c0_i32 = arith.constant 0 : i32
    %c0_i32_0 = arith.constant 0 : i32
    %c0_i32_1 = arith.constant 0 : i32
    return %c0_i32, %c0_i32_0 : i32, i32
  }
  func.func @transform_2(%arg0: i32) -> (i32, i32) {
    %c0_i32 = arith.constant 0 : i32
    %c0_i32_0 = arith.constant 0 : i32
    %c0_i32_1 = arith.constant 0 : i32
    return %c0_i32, %c0_i32_0 : i32, i32
  }
  func.func @transform_3(%arg0: i32) -> (i32, i32) {
    %c0_i32 = arith.constant 0 : i32
    %c0_i32_0 = arith.constant 0 : i32
    %c0_i32_1 = arith.constant 0 : i32
    return %c0_i32, %c0_i32_0 : i32, i32
  }
  func.func @transform_4(%arg0: i32) -> (i32, i32) {
    %c0_i32 = arith.constant 0 : i32
    %c0_i32_0 = arith.constant 0 : i32
    %c0_i32_1 = arith.constant 0 : i32
    return %c0_i32, %c0_i32_0 : i32, i32
  }
  func.func @transform_5(%arg0: i32) -> (i32, i32) {
    %c0_i32 = arith.constant 0 : i32
    %c0_i32_0 = arith.constant 0 : i32
    %c0_i32_1 = arith.constant 0 : i32
    return %c0_i32, %c0_i32_0 : i32, i32
  }
  func.func @transform_6(%arg0: i32) -> (i32, i32) {
    %c0_i32 = arith.constant 0 : i32
    %c0_i32_0 = arith.constant 0 : i32
    %c0_i32_1 = arith.constant 0 : i32
    return %c0_i32, %c0_i32_0 : i32, i32
  }
}

</mosaic_0001>

<bundles_post_ra>
// kernel: _output_layer_jit.1
= control target key start
LH: loop header
LB: loop body
LE: loop exit
PB: predicated region body
PF: predicated region fallthrough
CT: control target
= control target key end

     0   :  { %12 = vsyncpa [#allocation3], 0  ;;  %s1284_s0 = inlined_call_operand.hbm [shape: f32[16,128], index: 0, kind: input, shape index: {}]   ;;  %s1285_s1 = inlined_call_operand.hbm [shape: bf16[128,128], index: 1, kind: input, shape index: {}]   ;;  %s1286_s2 = inlined_call_operand.hbm [shape: bf16[256,128], index: 2, kind: input, shape index: {}]   ;;  %s1287_s3 = inlined_call_operand.hbm [shape: bf16[16,256], index: 3, kind: input, shape index: {}]   ;;  %s1288_s4 = inlined_call_operand.vmem [shape: f32[16,256], index: 4, kind: output, shape index: {0}]   ;;  %s1289_s5 = inlined_call_operand.vmem [shape: s32[16,4], index: 5, kind: output, shape index: {1}]   ;;  %s1290_s6 = inlined_call_operand.vmem [shape: s32[16,1], index: 6, kind: output, shape index: {2}]  }
   0x1   :  { %13 = vsyncpa [#allocation5], 0 }
   0x2   :  { %14 = vsyncpa [#allocation8], 0  ;;  %s1021_s21 = smov [#allocation4]  }
   0x3   :  { %s32_s22 = sshll.u32 %s1021_s21, 4  ;;  %s33_s22 = int_to_ptr.vmem [resolvable:$true] %s32_s22 }
   0x4   :  { %s943_s23 = scalar_lea.vmem %s33_s22, 1024  ;;  %p948_p1 = scmp.lt.s32.totalorder %s33_s22, %s33_s22 }
   0x5   :  { %p944_p0 = scmp.ne.s32.totalorder %s33_s22, %s943_s23  ;;  %p949_p2 = scmp.lt.s32.totalorder %s943_s23, %s943_s23 }
   0x7   :  { %p950_p3 = por %p949_p2, %p948_p1 }
   0x9   :  { %p951_p4 = pnand %p950_p3, %p944_p0 }
   0xb   :  { %954 = shalt.err (!%p951_p4)
}
   0xc   :  { %s1022_s24 = smov 64   ;;  %s1023_s25 = smov 4  }
   0xd   :  { %38 = dma.hbm_to_vmem [thread:$0]  %s1285_s1, 1024, %s33_s22, [#allocation5], %s1022_s24, %s1022_s24, %s1023_s25  }
   0xe   :  { %s1024_s28 = smov [#allocation2]  }
   0xf   :  { %s20_s29 = sshll.u32 %s1024_s28, 4  ;;  %s21_s29 = int_to_ptr.vmem [resolvable:$true] %s20_s29 }
  0x10   :  { %s963_s30 = scalar_lea.vmem %s21_s29, 256  ;;  %p968_p6 = scmp.lt.s32.totalorder %s21_s29, %s21_s29 }
  0x11   :  { %p964_p5 = scmp.ne.s32.totalorder %s21_s29, %s963_s30  ;;  %p969_p7 = scmp.lt.s32.totalorder %s963_s30, %s963_s30 }
  0x13   :  { %p970_p8 = por %p969_p7, %p968_p6 }
  0x15   :  { %p971_p9 = pnand %p970_p8, %p964_p5 }
  0x17   :  { %974 = shalt.err (!%p971_p9)
}
  0x18   :  { %s1025_s7 = smov 128   ;;  %s1026_s8 = smov 8  }
  0x19   :  { %26 = dma.hbm_to_vmem [thread:$0]  %s1284_s0, 256, %s21_s29, [#allocation3], %s1025_s7, %s1025_s7, %s1026_s8  }
  0x1a   :  { %s1027_s11 = smov [#allocation6]   ;;  %s1028_s13 = smov [#allocation7]  }
  0x1b   :  { %s44_s12 = sshll.u32 %s1027_s11, 4  ;;  %s56_s1 = sshll.u32 %s1028_s13, 4  ;;  %s45_s12 = int_to_ptr.vmem [resolvable:$true] %s44_s12  ;;  %s57_s1 = int_to_ptr.vmem [resolvable:$true] %s56_s1 }
  0x1c   :  { %s983_s14 = scalar_lea.vmem %s45_s12, 2048  ;;  %p988_p11 = scmp.lt.s32.totalorder %s45_s12, %s45_s12 }
  0x1d   :  { %p984_p10 = scmp.ne.s32.totalorder %s45_s12, %s983_s14  ;;  %p989_p12 = scmp.lt.s32.totalorder %s983_s14, %s983_s14 }
  0x1f   :  { %p990_p13 = por %p989_p12, %p988_p11 }
  0x21   :  { %p991_p0 = pnand %p990_p13, %p984_p10 }
  0x23   :  { %994 = shalt.err (!%p991_p0)
}
  0x24   :  { %50 = dma.hbm_to_vmem [thread:$0]  %s1286_s2, 2048, %s45_s12, [#allocation5], %s1022_s24, %s1022_s24, %s1023_s25  }
  0x25   :  { %s1003_s0 = scalar_lea.vmem %s57_s1, 256  ;;  %p1008_p2 = scmp.lt.s32.totalorder %s57_s1, %s57_s1 }
  0x26   :  { %p1004_p1 = scmp.ne.s32.totalorder %s57_s1, %s1003_s0  ;;  %p1009_p3 = scmp.lt.s32.totalorder %s1003_s0, %s1003_s0 }
  0x28   :  { %p1010_p4 = por %p1009_p3, %p1008_p2 }
  0x2a   :  { %p1011_p5 = pnand %p1010_p4, %p1004_p1 }
  0x2c   :  { %1014 = shalt.err (!%p1011_p5)
}
  0x2d   :  { %62 = dma.hbm_to_vmem [thread:$0]  %s1287_s3, 256, %s57_s1, [#allocation8], %s1025_s7, %s1025_s7, %s1026_s8  }
  0x2e   :  { %1015 = dma.done.wait [#allocation3], 256  }
  0x2f   :  { %1016 = vsyncadd [#allocation3], 4294967040 }
  0x30   :  { %1017 = dma.done.wait [#allocation5], 3072  }
  0x31   :  { %1018 = vsyncadd [#allocation5], 4294964224 }
  0x32   :  { %1019 = dma.done.wait [#allocation8], 256  }
  0x33   :  { %1020 = vsyncadd [#allocation8], 4294967040  ;;  %v1029_v0 = vmov 0.0   ;;  %vm1030_vm0 = vmmov 0   ;;  %v885_v1 = vld [vmem:[#allocation4 + $0x38] sm:$0xff]   ;;  %v886_v2 = vld [vmem:[#allocation4 + $0x30] sm:$0xff]  }
  0x34   :  { %828 = vmatprep.subr.bf16.mxu0 %v1029_v0  ;;  %844 = vmatprep.mubr.msk.bf16.mxu0 %vm1030_vm0, %v1029_v0  ;;  %v887_v3 = vld [vmem:[#allocation4 + $0x28] sm:$0xff]   ;;  %v888_v4 = vld [vmem:[#allocation4 + $0x20] sm:$0xff]   ;;  %v893_v5 = vld [vmem:[#allocation6 + $0x78] sm:$0xff]  }
  0x35   :  { %829 = vmatpush3.bf16.msra.mxu0 %v885_v1  ;;  %v894_v6 = vld [vmem:[#allocation6 + $0x38] sm:$0xff]   ;;  %810 = vmatprep.subr.bf16.mxu1 %v893_v5  ;;  %v895_v7 = vld [vmem:[#allocation6 + $0x70] sm:$0xff]   ;;  %v897_v10 = vld [vmem:[#allocation6 + $0x68] sm:$0xff]  }
  0x36   :  { %830 = vmatprep.subr.bf16.mxu0 %v1029_v0  ;;  %811 = vmatpush3.bf16.xpose.msra.mxu1 %v894_v6  ;;  %v889_v8 = vld [vmem:[#allocation4 + $0x18] sm:$0xff]   ;;  %v896_v9 = vld [vmem:[#allocation6 + $0x30] sm:$0xff]   ;;  %v891_v12 = vld [vmem:[#allocation4 + $0x8] sm:$0xff]  }
  0x37   :  { %812 = vmatprep.subr.bf16.mxu1 %v895_v7  ;;  %v890_v11 = vld [vmem:[#allocation4 + $0x10] sm:$0xff]   ;;  %v898_v13 = vld [vmem:[#allocation6 + $0x28] sm:$0xff]   ;;  %v899_v14 = vld [vmem:[#allocation6 + $0x60] sm:$0xff]   ;;  %v1031_v7 = vmov 0  }
  0x38   :  { %v892_v15 = vld [vmem:[#allocation4] sm:$0xff]   ;;  %v78_v16 = vld [vmem:[#allocation2] sm:$0xff]  ;;  %v79_v17 = vld [vmem:[#allocation2 + $0x8] sm:$0xff] }
  0x39   :  { %831 = vmatpush3.bf16.msra.mxu0 %v886_v2  ;;  %v80_v18 = vpack.c.bf16 %v79_v17, %v78_v16  ;;  %v900_v19 = vld [vmem:[#allocation6 + $0x20] sm:$0xff]   ;;  %v901_v20 = vld [vmem:[#allocation6 + $0x58] sm:$0xff]   ;;  %v903_v22 = vld [vmem:[#allocation6 + $0x50] sm:$0xff]  }
  0x3a   :  { %832 = vmatprep.subr.bf16.mxu0 %v1029_v0  ;;  %v902_v21 = vld [vmem:[#allocation6 + $0x18] sm:$0xff]   ;;  %v904_v23 = vld [vmem:[#allocation6 + $0x10] sm:$0xff]   ;;  %v905_v24 = vld [vmem:[#allocation6 + $0x48] sm:$0xff]  }
  0x3b   :  { %v906_v25 = vld [vmem:[#allocation6 + $0x8] sm:$0xff]   ;;  %v907_v26 = vld [vmem:[#allocation6 + $0x40] sm:$0xff]  }
  0x3c   :  { %v908_v27 = vld [vmem:[#allocation6] sm:$0xff]   ;;  %v1096_v6 = vld [vmem:[#allocation7 + $0x8] sm:$0xff] }
  0x3d   :  { %833 = vmatpush3.bf16.msra.mxu0 %v887_v3  ;;  %v1094_v5 = vld [vmem:[#allocation7] sm:$0xff]  ;;  %vm132_vm2 = vcmp.gt.bf16.partialorder %v1096_v6, 0 }
  0x3e   :  { %834 = vmatprep.subr.bf16.mxu0 %v1029_v0  ;;  %813 = vmatpush3.bf16.xpose.msra.mxu1 %v896_v9  ;;  %vm131_vm1 = vcmp.gt.bf16.partialorder %v1094_v5, 0  ;;  %v505_v9 = vsel %vm132_vm2, 65537, %v1031_v7 }
  0x3f   :  { %814 = vmatprep.subr.bf16.mxu1 %v897_v10 }
  0x41   :  { %835 = vmatpush3.bf16.msra.mxu0 %v888_v4 }
  0x42   :  { %836 = vmatprep.subr.bf16.mxu0 %v1029_v0 }
  0x45   :  { %837 = vmatpush3.bf16.msra.mxu0 %v889_v8  ;;  %v504_v8 = vsel %vm131_vm1, 65537, %v1031_v7 }
  0x46   :  { %838 = vmatprep.subr.bf16.mxu0 %v1029_v0  ;;  %815 = vmatpush3.bf16.xpose.msra.mxu1 %v898_v13  ;;  %v506_v10 = vunpack.c.l.b16 %v504_v8  ;;  %v509_v13 = vunpack.c.h.b16 %v505_v9 }
  0x47   :  { %816 = vmatprep.subr.bf16.mxu1 %v899_v14 }
  0x48   :  { %vm510_vm3 = vcmp.ne.s32.totalorder %v506_v10, 0  ;;  %vm513_vm6 = vcmp.ne.s32.totalorder %v509_v13, 0 }
  0x49   :  { %839 = vmatpush3.bf16.msra.mxu0 %v890_v11  ;;  %v507_v11 = vunpack.c.h.b16 %v504_v8 }
  0x4a   :  { %840 = vmatprep.subr.bf16.mxu0 %v1029_v0 }
  0x4b   :  { %vm511_vm4 = vcmp.ne.s32.totalorder %v507_v11, 0 }
  0x4d   :  { %841 = vmatpush3.bf16.msra.mxu0 %v891_v12  ;;  %v508_v12 = vunpack.c.l.b16 %v505_v9 }
  0x4e   :  { %842 = vmatprep.subr.bf16.mxu0 %v1029_v0  ;;  %817 = vmatpush3.bf16.xpose.msra.mxu1 %v900_v19 }
  0x4f   :  { %818 = vmatprep.subr.bf16.mxu1 %v901_v20  ;;  %vm512_vm5 = vcmp.ne.s32.totalorder %v508_v12, 0 }
  0x51   :  { %843 = vmatpush3.bf16.msra.mxu0 %v892_v15 }
  0x54   :  { %845 = vmatmul.mubr.bf16.vlgmr.msra.gmra.mxu0 %v80_v18 }
  0x56   :  { %819 = vmatpush3.bf16.xpose.msra.mxu1 %v902_v21 }
  0x57   :  { %820 = vmatprep.subr.bf16.mxu1 %v903_v22 }
  0x5e   :  { %821 = vmatpush3.bf16.xpose.msra.mxu1 %v904_v23  ;;  %v494_v23 = vlaneseq }
  0x5f   :  { %822 = vmatprep.subr.bf16.mxu1 %v905_v24 }
  0x66   :  { %823 = vmatpush3.bf16.xpose.msra.mxu1 %v906_v25 }
  0x67   :  { %824 = vmatprep.subr.bf16.mxu1 %v907_v26 }
  0x6e   :  { %825 = vmatpush3.bf16.xpose.msra.mxu1 %v908_v27 }
 0x114   :  { %v215_v28 = vpop.f32.mrf.mxu0 }
 0x116   :  { %v846_v29 = vpop.f32.mrf.mxu0 }
 0x118   :  { %v218_v30 = vpop.f32.mrf.mxu0 }
 0x119   :  { %v222_v31 = vpack.c.bf16 %v218_v30, %v215_v28  ;;  %v495_v28 = vshrl.u32 %v494_v23, 7 }
 0x11a   :  { %v847_v32 = vpop.f32.mrf.mxu0 }
 0x11b   :  { %826 = vmatprep.mubr.bf16.mxu1 %v222_v31 }
 0x11c   :  { %827 = vmatmul.mubr.bf16.vlgmr.msra.gmra.mxu1 %v222_v31 }
 0x1dc   :  { %v353_v33 = vpop.f32.mrf.mxu1 }
 0x1de   :  { %v355_v34 = vpop.f32.mrf.mxu1 }
 0x1df   :  { %v362_v35 = vadd.f32 %v355_v34, %v353_v33 }
 0x1e0   :  { %v357_v36 = vpop.f32.mrf.mxu1 }
 0x1e1   :  { %v363_v37 = vadd.f32 %v362_v35, %v357_v36 }
 0x1e2   :  { %v359_v38 = vpop.f32.mrf.mxu1 }
 0x1e3   :  { %v364_v39 = vadd.f32 %v363_v37, %v359_v38 }
 0x1e5   :  { %365 = vadd.xlane.f32.xlu0 %v364_v39 }
 0x26e   :  { %v366_v40 = vpop.xlane.xlu0 %365 }
 0x26f   :  { %v367_v41 = vrot.slane %v366_v40, 4 }
 0x271   :  { %v368_v42 = vadd.f32 %v367_v41, %v366_v40 }
 0x273   :  { %v369_v43 = vrot.slane %v368_v42, 2 }
 0x275   :  { %v370_v44 = vadd.f32 %v369_v43, %v368_v42 }
 0x277   :  { %v371_v45 = vrot.slane %v370_v44, 1 }
 0x279   :  { %v372_v46 = vadd.f32 %v371_v45, %v370_v44 }
 0x27b   :  { %848 = vpush %v372_v46 }
 0x2ac   :  { %s849_s2 = spop %848 }
 0x2ad   :  { %s374_s3 = smul.f32 0.00024414063, %s849_s2 }
 0x2af   :  { %v375_v47 = vstv %s374_s3 }
 0x2b0   :  { %v376_v48 = vsub.f32 %v353_v33, %v375_v47  ;;  %v377_v49 = vsub.f32 %v355_v34, %v375_v47  ;;  %v378_v50 = vsub.f32 %v357_v36, %v375_v47  ;;  %v379_v51 = vsub.f32 %v359_v38, %v375_v47 }
 0x2b1   :  { %v496_v33 = vadd.s32 8, %v495_v28  ;;  %v497_v38 = vcvt.s32.f32 %v495_v28 }
 0x2b2   :  { %v380_v52 = vmul.f32 %v376_v48, %v376_v48  ;;  %v381_v53 = vmul.f32 %v377_v49, %v377_v49  ;;  %v382_v54 = vmul.f32 %v378_v50, %v378_v50  ;;  %v383_v56 = vmul.f32 %v379_v51, %v379_v51 }
 0x2b3   :  { %v498_v39 = vcvt.s32.f32 %v496_v33 }
 0x2b4   :  { %v384_v55 = vadd.f32 %v381_v53, %v380_v52 }
 0x2b6   :  { %v385_v57 = vadd.f32 %v384_v55, %v382_v54 }
 0x2b8   :  { %v386_v58 = vadd.f32 %v385_v57, %v383_v56 }
 0x2ba   :  { %387 = vadd.xlane.f32.xlu0 %v386_v58 }
 0x343   :  { %v388_v59 = vpop.xlane.xlu0 %387 }
 0x344   :  { %v389_v60 = vrot.slane %v388_v59, 4 }
 0x346   :  { %v390_v61 = vadd.f32 %v389_v60, %v388_v59 }
 0x348   :  { %v391_v62 = vrot.slane %v390_v61, 2 }
 0x34a   :  { %v392_v63 = vadd.f32 %v391_v62, %v390_v61 }
 0x34c   :  { %v393_v1 = vrot.slane %v392_v63, 1 }
 0x34e   :  { %v394_v2 = vadd.f32 %v393_v1, %v392_v63 }
 0x350   :  { %850 = vpush %v394_v2 }
 0x381   :  { %s851_s19 = spop %850 }
 0x382   :  { %s396_s20 = smul.f32 0.00024420026, %s851_s19 }
 0x384   :  { %s397_s21 = sadd.f32 1e-12, %s396_s20 }
 0x386   :  { %v398_v3 = vstv %s397_s21 }
 0x387   :  { %909 = vrsqrt.f32 %v398_v3 }
 0x394   :  { %v910_v4 = vpop.eup %909 }
 0x395   :  { %852 = vpush %v910_v4 }
 0x3c6   :  { %s853_s22 = spop %852 }
 0x3c7   :  { %v401_v14 = vstv %s853_s22 }
 0x3c8   :  { %v1106_v15 = vmul.f32 %v401_v14, %v376_v48  ;;  %v1108_v16 = vmul.f32 %v401_v14, %v377_v49  ;;  %v1110_v17 = vmul.f32 %v401_v14, %v378_v50  ;;  %v1112_v18 = vmul.f32 %v401_v14, %v379_v51 }
 0x3ca   :  { %v514_v19 = vsel %vm510_vm3, %v1106_v15, -1e+30  ;;  %v515_v20 = vsel %vm511_vm4, %v1108_v16, -1e+30  ;;  %v516_v21 = vsel %vm512_vm5, %v1110_v17, -1e+30 }
 0x3cb   :  { %v517_v22 = vsel %vm513_vm6, %v1112_v18, -1e+30  ;;  %v518_v24 = vmax.f32 %v514_v19, %v516_v21 }
 0x3cc   :  { %v525_v25 = vmax.f32 %v515_v20, %v517_v22 }
 0x3cd   :  { %v519_v26 = vrot.slane %v518_v24, 4 }
 0x3ce   :  { %v526_v27 = vrot.slane %v525_v25, 4 }
 0x3cf   :  { %v520_v29 = vmax.f32 %v518_v24, %v519_v26 }
 0x3d0   :  { %v527_v30 = vmax.f32 %v525_v25, %v526_v27 }
 0x3d1   :  { %v521_v31 = vrot.slane %v520_v29, 2 }
 0x3d2   :  { %v528_v32 = vrot.slane %v527_v30, 2 }
 0x3d3   :  { %v522_v34 = vmax.f32 %v520_v29, %v521_v31 }
 0x3d4   :  { %v529_v35 = vmax.f32 %v527_v30, %v528_v32 }
 0x3d5   :  { %v523_v36 = vrot.slane %v522_v34, 1 }
 0x3d6   :  { %v530_v37 = vrot.slane %v529_v35, 1 }
 0x3d7   :  { %v524_v40 = vmax.f32 %v522_v34, %v523_v36 }
 0x3d8   :  { %v531_v41 = vmax.f32 %v529_v35, %v530_v37 }
 0x3d9   :  { %vm532_vm7 = vcmp.eq.f32.partialorder %v514_v19, %v524_v40  ;;  %vm534_vm9 = vcmp.eq.f32.partialorder %v516_v21, %v524_v40  ;;  %v500_v19 = vand.u32 127, %v494_v23 }
 0x3da   :  { %vm533_vm8 = vcmp.eq.f32.partialorder %v515_v20, %v531_v41  ;;  %vm535_vm10 = vcmp.eq.f32.partialorder %v517_v22, %v531_v41  ;;  %v536_v42 = vsel %vm532_vm7, %v497_v38, 16.0  ;;  %v538_v44 = vsel %vm534_vm9, %v498_v39, 16.0 }
 0x3db   :  { %v537_v43 = vsel %vm533_vm8, %v497_v38, 16.0  ;;  %v539_v45 = vsel %vm535_vm10, %v498_v39, 16.0  ;;  %v540_v46 = vmin.f32 %v536_v42, %v538_v44  ;;  %v501_v20 = vadd.s32 128, %v500_v19 }
 0x3dc   :  { %v547_v47 = vmin.f32 %v537_v43, %v539_v45  ;;  %v1138_v21 = vcvt.s32.f32 %v500_v19 }
 0x3dd   :  { %v541_v48 = vrot.slane %v540_v46, 4  ;;  %v1140_v22 = vcvt.s32.f32 %v501_v20 }
 0x3de   :  { %v548_v49 = vrot.slane %v547_v47, 4 }
 0x3df   :  { %v542_v50 = vmin.f32 %v540_v46, %v541_v48 }
 0x3e0   :  { %v549_v51 = vmin.f32 %v547_v47, %v548_v49 }
 0x3e1   :  { %v543_v52 = vrot.slane %v542_v50, 2 }
 0x3e2   :  { %v550_v53 = vrot.slane %v549_v51, 2 }
 0x3e3   :  { %v544_v54 = vmin.f32 %v542_v50, %v543_v52 }
 0x3e4   :  { %v551_v55 = vmin.f32 %v549_v51, %v550_v53 }
 0x3e5   :  { %v545_v56 = vrot.slane %v544_v54, 1 }
 0x3e6   :  { %v552_v57 = vrot.slane %v551_v55, 1 }
 0x3e7   :  { %v546_v58 = vmin.f32 %v544_v54, %v545_v56 }
 0x3e8   :  { %v553_v59 = vmin.f32 %v551_v55, %v552_v57 }
 0x3e9   :  { %vm554_vm11 = vcmp.eq.f32.partialorder %v497_v38, %v546_v58  ;;  %vm556_vm13 = vcmp.eq.f32.partialorder %v498_v39, %v546_v58 }
 0x3ea   :  { %vm555_vm12 = vcmp.eq.f32.partialorder %v497_v38, %v553_v59  ;;  %vm557_vm14 = vcmp.eq.f32.partialorder %v498_v39, %v553_v59 }
 0x3eb   :  { %vm558_vm15 = vmpackc.low %vm555_vm12, %vm554_vm11 }
 0x3ec   :  { %vm560_vm0 = vmand %vm131_vm1, %vm558_vm15 }
 0x3ed   :  { %v562_v60 = vsel %vm560_vm0, 65537, %v1031_v7  ;;  %vm559_vm3 = vmpackc.low %vm557_vm14, %vm556_vm13 }
 0x3ee   :  { %v564_v61 = vunpack.c.l.b16 %v562_v60  ;;  %v565_v62 = vunpack.c.h.b16 %v562_v60  ;;  %vm561_vm4 = vmand %vm132_vm2, %vm559_vm3 }
 0x3ef   :  { %v563_v63 = vsel %vm561_vm4, 65537, %v1031_v7 }
 0x3f0   :  { %vm568_vm5 = vcmp.ne.s32.totalorder %v564_v61, 0  ;;  %vm569_vm6 = vcmp.ne.s32.totalorder %v565_v62, 0  ;;  %v566_v1 = vunpack.c.l.b16 %v563_v63  ;;  %v567_v2 = vunpack.c.h.b16 %v563_v63 }
 0x3f1   :  { %v591_v3 = vsel %vm568_vm5, %v1106_v15, -1e+30  ;;  %v592_v4 = vsel %vm569_vm6, %v1108_v16, -1e+30  ;;  %v797_v5 = vsel %vm568_vm5, 1.0, %v1029_v0  ;;  %v798_v8 = vsel %vm569_vm6, 1.0, %v1029_v0 }
 0x3f2   :  { %v595_v9 = vmax.f32 %v591_v3, %v592_v4  ;;  %vm570_vm1 = vcmp.ne.s32.totalorder %v566_v1, 0  ;;  %vm571_vm7 = vcmp.ne.s32.totalorder %v567_v2, 0  ;;  %v1129_v10 = vadd.f32 %v798_v8, %v797_v5 }
 0x3f3   :  { %v593_v6 = vsel %vm570_vm1, %v1110_v17, -1e+30  ;;  %v594_v7 = vsel %vm571_vm7, %v1112_v18, -1e+30  ;;  %v799_v11 = vsel %vm570_vm1, 1.0, %v1029_v0  ;;  %v800_v12 = vsel %vm571_vm7, 1.0, %v1029_v0 }
 0x3f4   :  { %596 = vmax.xlane.f32.xlu1 %v595_v9  ;;  %v1135_v13 = vadd.f32 %v800_v12, %v799_v11  ;;  %v598_v14 = vmax.f32 %v593_v6, %v594_v7  ;;  %vm588_vm5 = vcmask 7168   ;;  %v454_v9 = vmax.f32 %v1106_v15, %v1108_v16 }
 0x3f8   :  { %599 = vmax.xlane.f32.xlu1 %v598_v14 }
 0x47d   :  { %v597_v24 = vpop.xlane.xlu1 %596 }
 0x47e   :  { %vm601_vm2 = vcmp.eq.f32.partialorder %v591_v3, %v597_v24  ;;  %vm602_vm8 = vcmp.eq.f32.partialorder %v592_v4, %v597_v24  ;;  %vm605_vm9 = vcmp.gt.f32.partialorder %v597_v24, -1e+30 }
 0x47f   :  { %vm611_vm10 = vmand %vm601_vm2, %vm605_vm9 }
 0x480   :  { %vm612_vm11 = vmand %vm602_vm8, %vm605_vm9  ;;  %v615_v0 = vsel %vm611_vm10, %v1138_v21, 256.0 }
 0x481   :  { %v600_v25 = vpop.xlane.xlu1 %599  ;;  %v616_v26 = vsel %vm612_vm11, %v1140_v22, 256.0 }
 0x482   :  { %vm603_vm12 = vcmp.eq.f32.partialorder %v593_v6, %v600_v25  ;;  %vm604_vm13 = vcmp.eq.f32.partialorder %v594_v7, %v600_v25  ;;  %vm606_vm14 = vcmp.gt.f32.partialorder %v600_v25, -1e+30  ;;  %v619_v23 = vmin.f32 %v615_v0, %v616_v26 }
 0x483   :  { %vm613_vm15 = vmand %vm603_vm12, %vm606_vm14 }
 0x484   :  { %620 = vmin.xlane.f32.xlu0 %v619_v23  ;;  %vm614_vm0 = vmand %vm604_vm13, %vm606_vm14  ;;  %v617_v27 = vsel %vm613_vm15, %v1138_v21, 256.0 }
 0x485   :  { %v618_v28 = vsel %vm614_vm0, %v1140_v22, 256.0 }
 0x486   :  { %v622_v29 = vmin.f32 %v617_v27, %v618_v28 }
 0x488   :  { %623 = vmin.xlane.f32.xlu1 %v622_v29 }
 0x50d   :  { %v621_v30 = vpop.xlane.xlu0 %620 }
 0x50e   :  { %v858_v31 = vtrunc.f32 %v621_v30  ;;  %vm629_vm3 = vcmp.eq.f32.partialorder %v1138_v21, %v621_v30  ;;  %vm630_vm4 = vcmp.eq.f32.partialorder %v1140_v22, %v621_v30 }
 0x50f   :  { %v633_v32 = vsel %vm629_vm3, -1e+30, %v591_v3  ;;  %v634_v33 = vsel %vm630_vm4, -1e+30, %v592_v4  ;;  %vm669_vm4 = vcmask 15368  }
 0x510   :  { %v859_v34 = vcvt.f32.s32 %v858_v31  ;;  %v637_v35 = vmax.f32 %v633_v32, %v634_v33 }
 0x511   :  { %v624_v36 = vpop.xlane.xlu1 %623 }
 0x512   :  { %627 = vst.msk [vmem:[%s1289_s5] sm:$0xff] %vm588_vm5, %v859_v34  ;;  %v860_v37 = vtrunc.f32 %v624_v36  ;;  %vm631_vm6 = vcmp.eq.f32.partialorder %v1138_v21, %v624_v36  ;;  %vm632_vm1 = vcmp.eq.f32.partialorder %v1140_v22, %v624_v36  ;;  %638 = vmax.xlane.f32.xlu0 %v637_v35 }
 0x513   :  { %v635_v38 = vsel %vm631_vm6, -1e+30, %v593_v6  ;;  %v636_v39 = vsel %vm632_vm1, -1e+30, %v594_v7  ;;  %v457_v6 = vmax.f32 %v1110_v17, %v1112_v18 }
 0x514   :  { %v861_v40 = vcvt.f32.s32 %v860_v37  ;;  %v640_v41 = vmax.f32 %v635_v38, %v636_v39 }
 0x516   :  { %628 = vst.msk [vmem:[%s1289_s5 + $0x8] sm:$0xff] %vm588_vm5, %v861_v40  ;;  %641 = vmax.xlane.f32.xlu1 %v640_v41 }
 0x59b   :  { %v639_v42 = vpop.xlane.xlu0 %638 }
 0x59c   :  { %vm643_vm7 = vcmp.eq.f32.partialorder %v633_v32, %v639_v42  ;;  %vm644_vm2 = vcmp.eq.f32.partialorder %v634_v33, %v639_v42  ;;  %vm647_vm8 = vcmp.gt.f32.partialorder %v639_v42, -1e+30 }
 0x59d   :  { %vm653_vm9 = vmand %vm643_vm7, %vm647_vm8 }
 0x59e   :  { %vm654_vm10 = vmand %vm644_vm2, %vm647_vm8  ;;  %v657_v43 = vsel %vm653_vm9, %v1138_v21, 256.0 }
 0x59f   :  { %v642_v44 = vpop.xlane.xlu1 %641  ;;  %v658_v45 = vsel %vm654_vm10, %v1140_v22, 256.0 }
 0x5a0   :  { %vm645_vm11 = vcmp.eq.f32.partialorder %v635_v38, %v642_v44  ;;  %vm646_vm12 = vcmp.eq.f32.partialorder %v636_v39, %v642_v44  ;;  %vm648_vm13 = vcmp.gt.f32.partialorder %v642_v44, -1e+30  ;;  %v661_v46 = vmin.f32 %v657_v43, %v658_v45 }
 0x5a1   :  { %vm655_vm14 = vmand %vm645_vm11, %vm648_vm13  ;;  %v406_v44 = vmax.f32 %v1106_v15, %v1110_v17  ;;  %v413_v45 = vmax.f32 %v1108_v16, %v1112_v18 }
 0x5a2   :  { %662 = vmin.xlane.f32.xlu0 %v661_v46  ;;  %vm656_vm15 = vmand %vm646_vm12, %vm648_vm13  ;;  %v659_v47 = vsel %vm655_vm14, %v1138_v21, 256.0 }
 0x5a3   :  { %v660_v48 = vsel %vm656_vm15, %v1140_v22, 256.0  ;;  %v407_v46 = vrot.slane %v406_v44, 4 }
 0x5a4   :  { %v664_v49 = vmin.f32 %v659_v47, %v660_v48  ;;  %v414_v47 = vrot.slane %v413_v45, 4 }
 0x5a5   :  { %v408_v48 = vmax.f32 %v406_v44, %v407_v46 }
 0x5a6   :  { %665 = vmin.xlane.f32.xlu1 %v664_v49  ;;  %v415_v49 = vmax.f32 %v413_v45, %v414_v47 }
 0x62b   :  { %v663_v50 = vpop.xlane.xlu0 %662 }
 0x62c   :  { %v862_v51 = vtrunc.f32 %v663_v50  ;;  %vm672_vm0 = vcmp.eq.f32.partialorder %v1138_v21, %v663_v50  ;;  %vm673_vm3 = vcmp.eq.f32.partialorder %v1140_v22, %v663_v50  ;;  %v409_v50 = vrot.slane %v408_v48, 2 }
 0x62d   :  { %v676_v52 = vsel %vm672_vm0, -1e+30, %v633_v32  ;;  %v677_v53 = vsel %vm673_vm3, -1e+30, %v634_v33 }
 0x62e   :  { %v863_v54 = vcvt.f32.s32 %v862_v51  ;;  %v680_v55 = vmax.f32 %v676_v52, %v677_v53  ;;  %v416_v51 = vrot.slane %v415_v49, 2 }
 0x62f   :  { %v666_v56 = vpop.xlane.xlu1 %665 }
 0x630   :  { %670 = vst.msk [vmem:[%s1289_s5] sm:$0xff] %vm669_vm4, %v863_v54  ;;  %v864_v57 = vtrunc.f32 %v666_v56  ;;  %vm674_vm6 = vcmp.eq.f32.partialorder %v1138_v21, %v666_v56  ;;  %vm675_vm1 = vcmp.eq.f32.partialorder %v1140_v22, %v666_v56  ;;  %681 = vmax.xlane.f32.xlu0 %v680_v55 }
 0x631   :  { %v678_v58 = vsel %vm674_vm6, -1e+30, %v635_v38  ;;  %v679_v59 = vsel %vm675_vm1, -1e+30, %v636_v39 }
 0x632   :  { %v865_v60 = vcvt.f32.s32 %v864_v57  ;;  %v683_v61 = vmax.f32 %v678_v58, %v679_v59 }
 0x634   :  { %671 = vst.msk [vmem:[%s1289_s5 + $0x8] sm:$0xff] %vm669_vm4, %v865_v60  ;;  %684 = vmax.xlane.f32.xlu1 %v683_v61  ;;  %vm712_vm4 = vcmask 23568  }
 0x6b9   :  { %v682_v62 = vpop.xlane.xlu0 %681 }
 0x6ba   :  { %vm686_vm7 = vcmp.eq.f32.partialorder %v676_v52, %v682_v62  ;;  %vm687_vm2 = vcmp.eq.f32.partialorder %v677_v53, %v682_v62  ;;  %vm690_vm8 = vcmp.gt.f32.partialorder %v682_v62, -1e+30 }
 0x6bb   :  { %vm696_vm9 = vmand %vm686_vm7, %vm690_vm8 }
 0x6bc   :  { %vm697_vm10 = vmand %vm687_vm2, %vm690_vm8  ;;  %v700_v63 = vsel %vm696_vm9, %v1138_v21, 256.0 }
 0x6bd   :  { %v685_v1 = vpop.xlane.xlu1 %684  ;;  %v701_v2 = vsel %vm697_vm10, %v1140_v22, 256.0 }
 0x6be   :  { %vm688_vm11 = vcmp.eq.f32.partialorder %v678_v58, %v685_v1  ;;  %vm689_vm12 = vcmp.eq.f32.partialorder %v679_v59, %v685_v1  ;;  %vm691_vm13 = vcmp.gt.f32.partialorder %v685_v1, -1e+30  ;;  %v704_v3 = vmin.f32 %v700_v63, %v701_v2 }
 0x6bf   :  { %vm698_vm14 = vmand %vm688_vm11, %vm691_vm13 }
 0x6c0   :  { %705 = vmin.xlane.f32.xlu0 %v704_v3  ;;  %vm699_vm15 = vmand %vm689_vm12, %vm691_vm13  ;;  %v702_v4 = vsel %vm698_vm14, %v1138_v21, 256.0 }
 0x6c1   :  { %v703_v5 = vsel %vm699_vm15, %v1140_v22, 256.0 }
 0x6c2   :  { %v707_v8 = vmin.f32 %v702_v4, %v703_v5 }
 0x6c4   :  { %708 = vmin.xlane.f32.xlu1 %v707_v8  ;;  %455 = vmax.xlane.f32.xlu0 %v454_v9 }
 0x6c8   :  { %458 = vmax.xlane.f32.xlu1 %v457_v6 }
 0x749   :  { %v706_v7 = vpop.xlane.xlu0 %705 }
 0x74a   :  { %v866_v11 = vtrunc.f32 %v706_v7  ;;  %vm715_vm0 = vcmp.eq.f32.partialorder %v1138_v21, %v706_v7  ;;  %vm716_vm3 = vcmp.eq.f32.partialorder %v1140_v22, %v706_v7 }
 0x74b   :  { %v1182_v12 = vsel %vm715_vm0, -1e+30, %v676_v52  ;;  %v1184_v14 = vsel %vm716_vm3, -1e+30, %v677_v53  ;;  %v410_v52 = vmax.f32 %v408_v48, %v409_v50  ;;  %v417_v53 = vmax.f32 %v415_v49, %v416_v51 }
 0x74c   :  { %v867_v19 = vcvt.f32.s32 %v866_v11  ;;  %v723_v20 = vmax.f32 %v1182_v12, %v1184_v14 }
 0x74d   :  { %v709_v24 = vpop.xlane.xlu1 %708  ;;  %v456_v0 = vpop.xlane.xlu0 %455  ;;  %v411_v54 = vrot.slane %v410_v52, 1  ;;  %v418_v55 = vrot.slane %v417_v53, 1 }
 0x74e   :  { %713 = vst.msk [vmem:[%s1289_s5] sm:$0xff] %vm712_vm4, %v867_v19  ;;  %v868_v25 = vtrunc.f32 %v709_v24  ;;  %v1193_v26 = vsub.f32 %v1106_v15, %v456_v0  ;;  %v1196_v23 = vsub.f32 %v1108_v16, %v456_v0  ;;  %724 = vmax.xlane.f32.xlu0 %v723_v20  ;;  %vm717_vm6 = vcmp.eq.f32.partialorder %v1138_v21, %v709_v24 }
 0x74f   :  { %vm718_vm1 = vcmp.eq.f32.partialorder %v1140_v22, %v709_v24  ;;  %v1200_v27 = vsel %vm717_vm6, -1e+30, %v678_v58  ;;  %v412_v56 = vmax.f32 %v410_v52, %v411_v54 }
 0x750   :  { %v869_v28 = vcvt.f32.s32 %v868_v25  ;;  %v464_v29 = vmul.f32 1.442695, %v1193_v26  ;;  %v466_v30 = vmul.f32 1.442695, %v1196_v23  ;;  %v1204_v31 = vsel %vm718_vm1, -1e+30, %v679_v59 }
 0x751   :  { %v459_v32 = vpop.xlane.xlu1 %458  ;;  %v726_v33 = vmax.f32 %v1200_v27, %v1204_v31  ;;  %v1236_v59 = vsub.f32 %v1106_v15, %v412_v56 }
 0x752   :  { %714 = vst.msk [vmem:[%s1289_s5 + $0x8] sm:$0xff] %vm712_vm4, %v869_v28  ;;  %911 = vpow2.f32 %v464_v29  ;;  %v1213_v34 = vsub.f32 %v1110_v17, %v459_v32  ;;  %v1216_v35 = vsub.f32 %v1112_v18, %v459_v32 }
 0x753   :  { %913 = vpow2.f32 %v466_v30  ;;  %727 = vmax.xlane.f32.xlu1 %v726_v33  ;;  %v424_v63 = vmul.f32 1.442695, %v1236_v59 }
 0x754   :  { %v468_v36 = vmul.f32 1.442695, %v1213_v34  ;;  %v470_v37 = vmul.f32 1.442695, %v1216_v35 }
 0x756   :  { %915 = vpow2.f32 %v468_v36 }
 0x757   :  { %917 = vpow2.f32 %v470_v37 }
 0x75f   :  { %v912_v38 = vpop.eup %911 }
 0x760   :  { %v914_v39 = vpop.eup %913 }
 0x761   :  { %v472_v40 = vadd.f32 %v914_v39, %v912_v38 }
 0x763   :  { %v916_v41 = vpop.eup %915  ;;  %473 = vadd.xlane.f32.xlu0 %v472_v40 }
 0x764   :  { %v918_v42 = vpop.eup %917 }
 0x765   :  { %v475_v43 = vadd.f32 %v918_v42, %v916_v41 }
 0x767   :  { %476 = vadd.xlane.f32.xlu1 %v475_v43  ;;  %581 = vadd.xlane.f32.xlu0 %v1129_v10  ;;  %v419_v10 = vmax.f32 %v417_v53, %v418_v55 }
 0x769   :  { %v1230_v57 = vsub.f32 %v1112_v18, %v419_v10  ;;  %v1233_v58 = vsub.f32 %v1108_v16, %v419_v10 }
 0x76b   :  { %584 = vadd.xlane.f32.xlu1 %v1135_v13  ;;  %v1227_v13 = vsub.f32 %v1110_v17, %v412_v56  ;;  %v430_v61 = vmul.f32 1.442695, %v1230_v57  ;;  %v426_v62 = vmul.f32 1.442695, %v1233_v58 }
 0x76d   :  { %v428_v60 = vmul.f32 1.442695, %v1227_v13 }
 0x76f   :  { %919 = vpow2.f32 %v428_v60 }
 0x770   :  { %921 = vpow2.f32 %v430_v61 }
 0x771   :  { %923 = vpow2.f32 %v426_v62 }
 0x772   :  { %925 = vpow2.f32 %v424_v63 }
 0x77c   :  { %v920_v17 = vpop.eup %919 }
 0x77d   :  { %v922_v18 = vpop.eup %921 }
 0x77e   :  { %v924_v1 = vpop.eup %923 }
 0x77f   :  { %v926_v16 = vpop.eup %925  ;;  %v439_v2 = vadd.f32 %v924_v1, %v922_v18 }
 0x780   :  { %v432_v3 = vadd.f32 %v926_v16, %v920_v17 }
 0x781   :  { %v440_v15 = vrot.slane %v439_v2, 4 }
 0x782   :  { %v433_v4 = vrot.slane %v432_v3, 4 }
 0x783   :  { %v441_v5 = vadd.f32 %v440_v15, %v439_v2 }
 0x784   :  { %v434_v8 = vadd.f32 %v433_v4, %v432_v3 }
 0x785   :  { %v442_v6 = vrot.slane %v441_v5, 2 }
 0x786   :  { %v435_v7 = vrot.slane %v434_v8, 2 }
 0x787   :  { %v443_v0 = vadd.f32 %v442_v6, %v441_v5 }
 0x789   :  { %v444_v28 = vrot.slane %v443_v0, 1 }
 0x78b   :  { %v445_v32 = vadd.f32 %v444_v28, %v443_v0 }
 0x78d   :  { %927 = vlog2.f32 %v445_v32 }
 0x79a   :  { %v928_v40 = vpop.eup %927 }
 0x79b   :  { %v449_v42 = vmul.f32 0.6931472, %v928_v40 }
 0x79d   :  { %v451_v46 = vsub.f32 %v1233_v58, %v449_v42  ;;  %v453_v54 = vsub.f32 %v1230_v57, %v449_v42 }
 0x7d7   :  { %v725_v9 = vpop.xlane.xlu0 %724 }
 0x7d8   :  { %vm729_vm7 = vcmp.eq.f32.partialorder %v1182_v12, %v725_v9  ;;  %vm730_vm2 = vcmp.eq.f32.partialorder %v1184_v14, %v725_v9  ;;  %vm733_vm8 = vcmp.gt.f32.partialorder %v725_v9, -1e+30  ;;  %v436_v12 = vadd.f32 %v435_v7, %v434_v8 }
 0x7d9   :  { %vm739_vm9 = vmand %vm729_vm7, %vm733_vm8 }
 0x7da   :  { %vm740_vm10 = vmand %vm730_vm2, %vm733_vm8  ;;  %v743_v11 = vsel %vm739_vm9, %v1138_v21, 256.0  ;;  %v437_v30 = vrot.slane %v436_v12, 1 }
 0x7db   :  { %v744_v19 = vsel %vm740_vm10, %v1140_v22, 256.0 }
 0x7dc   :  { %v728_v20 = vpop.xlane.xlu1 %727  ;;  %v747_v24 = vmin.f32 %v743_v11, %v744_v19  ;;  %v438_v33 = vadd.f32 %v437_v30, %v436_v12 }
 0x7dd   :  { %vm731_vm11 = vcmp.eq.f32.partialorder %v1200_v27, %v728_v20  ;;  %vm732_vm12 = vcmp.eq.f32.partialorder %v1204_v31, %v728_v20  ;;  %vm734_vm13 = vcmp.gt.f32.partialorder %v728_v20, -1e+30 }
 0x7de   :  { %748 = vmin.xlane.f32.xlu0 %v747_v24  ;;  %vm741_vm14 = vmand %vm731_vm11, %vm734_vm13  ;;  %929 = vlog2.f32 %v438_v33 }
 0x7df   :  { %vm742_vm15 = vmand %vm732_vm12, %vm734_vm13  ;;  %v745_v14 = vsel %vm741_vm14, %v1138_v21, 256.0 }
 0x7e0   :  { %v746_v25 = vsel %vm742_vm15, %v1140_v22, 256.0 }
 0x7e1   :  { %v750_v29 = vmin.f32 %v745_v14, %v746_v25 }
 0x7e3   :  { %751 = vmin.xlane.f32.xlu1 %v750_v29 }
 0x7eb   :  { %v930_v22 = vpop.eup %929 }
 0x7ec   :  { %v474_v27 = vpop.xlane.xlu0 %473  ;;  %v447_v43 = vmul.f32 0.6931472, %v930_v22 }
 0x7ed   :  { %931 = vlog2.f32 %v474_v27 }
 0x7ee   :  { %v450_v47 = vsub.f32 %v1236_v59, %v447_v43  ;;  %v452_v55 = vsub.f32 %v1227_v13, %v447_v43 }
 0x7f0   :  { %v477_v31 = vpop.xlane.xlu1 %476  ;;  %v582_v36 = vpop.xlane.xlu0 %581 }
 0x7f1   :  { %933 = vlog2.f32 %v477_v31  ;;  %v854_v37 = vtrunc.f32 %v582_v36 }
 0x7f3   :  { %v855_v38 = vcvt.f32.s32 %v854_v37 }
 0x7f4   :  { %v585_v39 = vpop.xlane.xlu1 %584 }
 0x7f5   :  { %589 = vst.msk [vmem:[%s1290_s6] sm:$0xff] %vm588_vm5, %v855_v38  ;;  %v856_v21 = vtrunc.f32 %v585_v39 }
 0x7f7   :  { %v857_v41 = vcvt.f32.s32 %v856_v21 }
 0x7f9   :  { %590 = vst.msk [vmem:[%s1290_s6 + $0x8] sm:$0xff] %vm588_vm5, %v857_v41  ;;  %vm755_vm5 = vcmask 31768  }
 0x7fa   :  { %v932_v44 = vpop.eup %931 }
 0x7fb   :  { %v479_v45 = vmul.f32 0.6931472, %v932_v44 }
 0x7fd   :  { %v482_v48 = vsub.f32 %v1193_v26, %v479_v45  ;;  %v483_v49 = vsub.f32 %v1196_v23, %v479_v45 }
 0x7fe   :  { %v934_v50 = vpop.eup %933 }
 0x7ff   :  { %v486_v51 = vadd.f32 %v482_v48, %v450_v47  ;;  %v487_v52 = vadd.f32 %v483_v49, %v451_v46  ;;  %v481_v53 = vmul.f32 0.6931472, %v934_v50 }
 0x801   :  { %490 = vst [vmem:[%s1288_s4] sm:$0xff] %v486_v51  ;;  %491 = vst [vmem:[%s1288_s4 + $0x8] sm:$0xff] %v487_v52  ;;  %v484_v26 = vsub.f32 %v1213_v34, %v481_v53  ;;  %v485_v23 = vsub.f32 %v1216_v35, %v481_v53 }
 0x803   :  { %v488_v56 = vadd.f32 %v484_v26, %v452_v55  ;;  %v489_v10 = vadd.f32 %v485_v23, %v453_v54 }
 0x805   :  { %492 = vst [vmem:[%s1288_s4 + $0x10] sm:$0xff] %v488_v56  ;;  %493 = vst [vmem:[%s1288_s4 + $0x18] sm:$0xff] %v489_v10 }
 0x867   :  { %v749_v58 = vpop.xlane.xlu0 %748 }
 0x868   :  { %v870_v59 = vtrunc.f32 %v749_v58 }
 0x86a   :  { %v871_v57 = vcvt.f32.s32 %v870_v59 }
 0x86c   :  { %756 = vst.msk [vmem:[%s1289_s5] sm:$0xff] %vm755_vm5, %v871_v57  ;;  %v752_v34 = vpop.xlane.xlu1 %751 }
 0x86d   :  { %v872_v35 = vtrunc.f32 %v752_v34 }
 0x86f   :  { %v873_v13 = vcvt.f32.s32 %v872_v35 }
 0x871   :  { %757 = vst.msk [vmem:[%s1289_s5 + $0x8] sm:$0xff] %vm755_vm5, %v873_v13 }
 0x872   :  { %770 = vsyncpa [#allocation3], 1 }
 0x873   :  { %771 = vsyncpa [#allocation5], 1 }
 0x874   :  { %772 = vsyncpa [#allocation8], 1 }

// kernel: _output_layer_jit.1
= control target key start
LH: loop header
LB: loop body
LE: loop exit
PB: predicated region body
PF: predicated region fallthrough
CT: control target
= control target key end

     0   :  { %12 = vsyncpa [#allocation3], 0  ;;  %s1284_s0 = inlined_call_operand.hbm [shape: f32[16,128], index: 0, kind: input, shape index: {}]   ;;  %s1285_s1 = inlined_call_operand.hbm [shape: bf16[128,128], index: 1, kind: input, shape index: {}]   ;;  %s1286_s2 = inlined_call_operand.hbm [shape: bf16[256,128], index: 2, kind: input, shape index: {}]   ;;  %s1287_s3 = inlined_call_operand.hbm [shape: bf16[16,256], index: 3, kind: input, shape index: {}]   ;;  %s1288_s4 = inlined_call_operand.vmem [shape: f32[16,256], index: 4, kind: output, shape index: {0}]   ;;  %s1289_s5 = inlined_call_operand.vmem [shape: s32[16,4], index: 5, kind: output, shape index: {1}]   ;;  %s1290_s6 = inlined_call_operand.vmem [shape: s32[16,1], index: 6, kind: output, shape index: {2}]  }
   0x1   :  { %13 = vsyncpa [#allocation5], 0 }
   0x2   :  { %14 = vsyncpa [#allocation8], 0  ;;  %s1021_s21 = smov [#allocation4]  }
   0x3   :  { %s32_s22 = sshll.u32 %s1021_s21, 4  ;;  %s33_s22 = int_to_ptr.vmem [resolvable:$true] %s32_s22 }
   0x4   :  { %s943_s23 = scalar_lea.vmem %s33_s22, 1024  ;;  %p948_p1 = scmp.lt.s32.totalorder %s33_s22, %s33_s22 }
   0x5   :  { %p944_p0 = scmp.ne.s32.totalorder %s33_s22, %s943_s23  ;;  %p949_p2 = scmp.lt.s32.totalorder %s943_s23, %s943_s23 }
   0x7   :  { %p950_p3 = por %p949_p2, %p948_p1 }
   0x9   :  { %p951_p4 = pnand %p950_p3, %p944_p0 }
   0xb   :  { %954 = shalt.err (!%p951_p4)
}
   0xc   :  { %s1022_s24 = smov 64   ;;  %s1023_s25 = smov 4  }
   0xd   :  { %38 = dma.hbm_to_vmem [thread:$0]  %s1285_s1, 1024, %s33_s22, [#allocation5], %s1022_s24, %s1022_s24, %s1023_s25  }
   0xe   :  { %s1024_s28 = smov [#allocation2]  }
   0xf   :  { %s20_s29 = sshll.u32 %s1024_s28, 4  ;;  %s21_s29 = int_to_ptr.vmem [resolvable:$true] %s20_s29 }
  0x10   :  { %s963_s30 = scalar_lea.vmem %s21_s29, 256  ;;  %p968_p6 = scmp.lt.s32.totalorder %s21_s29, %s21_s29 }
  0x11   :  { %p964_p5 = scmp.ne.s32.totalorder %s21_s29, %s963_s30  ;;  %p969_p7 = scmp.lt.s32.totalorder %s963_s30, %s963_s30 }
  0x13   :  { %p970_p8 = por %p969_p7, %p968_p6 }
  0x15   :  { %p971_p9 = pnand %p970_p8, %p964_p5 }
  0x17   :  { %974 = shalt.err (!%p971_p9)
}
  0x18   :  { %s1025_s7 = smov 128   ;;  %s1026_s8 = smov 8  }
  0x19   :  { %26 = dma.hbm_to_vmem [thread:$0]  %s1284_s0, 256, %s21_s29, [#allocation3], %s1025_s7, %s1025_s7, %s1026_s8  }
  0x1a   :  { %s1027_s11 = smov [#allocation6]   ;;  %s1028_s13 = smov [#allocation7]  }
  0x1b   :  { %s44_s12 = sshll.u32 %s1027_s11, 4  ;;  %s56_s1 = sshll.u32 %s1028_s13, 4  ;;  %s45_s12 = int_to_ptr.vmem [resolvable:$true] %s44_s12  ;;  %s57_s1 = int_to_ptr.vmem [resolvable:$true] %s56_s1 }
  0x1c   :  { %s983_s14 = scalar_lea.vmem %s45_s12, 2048  ;;  %p988_p11 = scmp.lt.s32.totalorder %s45_s12, %s45_s12 }
  0x1d   :  { %p984_p10 = scmp.ne.s32.totalorder %s45_s12, %s983_s14  ;;  %p989_p12 = scmp.lt.s32.totalorder %s983_s14, %s983_s14 }
  0x1f   :  { %p990_p13 = por %p989_p12, %p988_p11 }
  0x21   :  { %p991_p0 = pnand %p990_p13, %p984_p10 }
  0x23   :  { %994 = shalt.err (!%p991_p0)
}
  0x24   :  { %50 = dma.hbm_to_vmem [thread:$0]  %s1286_s2, 2048, %s45_s12, [#allocation5], %s1022_s24, %s1022_s24, %s1023_s25  }
  0x25   :  { %s1003_s0 = scalar_lea.vmem %s57_s1, 256  ;;  %p1008_p2 = scmp.lt.s32.totalorder %s57_s1, %s57_s1 }
  0x26   :  { %p1004_p1 = scmp.ne.s32.totalorder %s57_s1, %s1003_s0  ;;  %p1009_p3 = scmp.lt.s32.totalorder %s1003_s0, %s1003_s0 }
  0x28   :  { %p1010_p4 = por %p1009_p3, %p1008_p2 }
  0x2a   :  { %p1011_p5 = pnand %p1010_p4, %p1004_p1 }
  0x2c   :  { %1014 = shalt.err (!%p1011_p5)
}
  0x2d   :  { %62 = dma.hbm_to_vmem [thread:$0]  %s1287_s3, 256, %s57_s1, [#allocation8], %s1025_s7, %s1025_s7, %s1026_s8  }
  0x2e   :  { %1015 = dma.done.wait [#allocation3], 256  }
  0x2f   :  { %1016 = vsyncadd [#allocation3], 4294967040 }
  0x30   :  { %1017 = dma.done.wait [#allocation5], 3072  }
  0x31   :  { %1018 = vsyncadd [#allocation5], 4294964224 }
  0x32   :  { %1019 = dma.done.wait [#allocation8], 256  }
  0x33   :  { %1020 = vsyncadd [#allocation8], 4294967040  ;;  %v1029_v0 = vmov 0.0   ;;  %vm1030_vm0 = vmmov 0   ;;  %v885_v1 = vld [vmem:[#allocation4 + $0x38] sm:$0xff]   ;;  %v886_v2 = vld [vmem:[#allocation4 + $0x30] sm:$0xff]  }
  0x34   :  { %828 = vmatprep.subr.bf16.mxu0 %v1029_v0  ;;  %844 = vmatprep.mubr.msk.bf16.mxu0 %vm1030_vm0, %v1029_v0  ;;  %v887_v3 = vld [vmem:[#allocation4 + $0x28] sm:$0xff]   ;;  %v888_v4 = vld [vmem:[#allocation4 + $0x20] sm:$0xff]   ;;  %v893_v5 = vld [vmem:[#allocation6 + $0x78] sm:$0xff]  }
  0x35   :  { %829 = vmatpush3.bf16.msra.mxu0 %v885_v1  ;;  %v894_v6 = vld [vmem:[#allocation6 + $0x38] sm:$0xff]   ;;  %810 = vmatprep.subr.bf16.mxu1 %v893_v5  ;;  %v895_v7 = vld [vmem:[#allocation6 + $0x70] sm:$0xff]   ;;  %v897_v10 = vld [vmem:[#allocation6 + $0x68] sm:$0xff]  }
  0x36   :  { %830 = vmatprep.subr.bf16.mxu0 %v1029_v0  ;;  %811 = vmatpush3.bf16.xpose.msra.mxu1 %v894_v6  ;;  %v889_v8 = vld [vmem:[#allocation4 + $0x18] sm:$0xff]   ;;  %v896_v9 = vld [vmem:[#allocation6 + $0x30] sm:$0xff]   ;;  %v891_v12 = vld [vmem:[#allocation4 + $0x8] sm:$0xff]  }
  0x37   :  { %812 = vmatprep.subr.bf16.mxu1 %v895_v7  ;;  %v890_v11 = vld [vmem:[#allocation4 + $0x10] sm:$0xff]   ;;  %v898_v13 = vld [vmem:[#allocation6 + $0x28] sm:$0xff]   ;;  %v899_v14 = vld [vmem:[#allocation6 + $0x60] sm:$0xff]   ;;  %v1031_v7 = vmov 0  }
  0x38   :  { %v892_v15 = vld [vmem:[#allocation4] sm:$0xff]   ;;  %v78_v16 = vld [vmem:[#allocation2] sm:$0xff]  ;;  %v79_v17 = vld [vmem:[#allocation2 + $0x8] sm:$0xff] }
  0x39   :  { %831 = vmatpush3.bf16.msra.mxu0 %v886_v2  ;;  %v80_v18 = vpack.c.bf16 %v79_v17, %v78_v16  ;;  %v900_v19 = vld [vmem:[#allocation6 + $0x20] sm:$0xff]   ;;  %v901_v20 = vld [vmem:[#allocation6 + $0x58] sm:$0xff]   ;;  %v903_v22 = vld [vmem:[#allocation6 + $0x50] sm:$0xff]  }
  0x3a   :  { %832 = vmatprep.subr.bf16.mxu0 %v1029_v0  ;;  %v902_v21 = vld [vmem:[#allocation6 + $0x18] sm:$0xff]   ;;  %v904_v23 = vld [vmem:[#allocation6 + $0x10] sm:$0xff]   ;;  %v905_v24 = vld [vmem:[#allocation6 + $0x48] sm:$0xff]  }
  0x3b   :  { %v906_v25 = vld [vmem:[#allocation6 + $0x8] sm:$0xff]   ;;  %v907_v26 = vld [vmem:[#allocation6 + $0x40] sm:$0xff]  }
  0x3c   :  { %v908_v27 = vld [vmem:[#allocation6] sm:$0xff]   ;;  %v1096_v6 = vld [vmem:[#allocation7 + $0x8] sm:$0xff] }
  0x3d   :  { %833 = vmatpush3.bf16.msra.mxu0 %v887_v3  ;;  %v1094_v5 = vld [vmem:[#allocation7] sm:$0xff]  ;;  %vm132_vm2 = vcmp.gt.bf16.partialorder %v1096_v6, 0 }
  0x3e   :  { %834 = vmatprep.subr.bf16.mxu0 %v1029_v0  ;;  %813 = vmatpush3.bf16.xpose.msra.mxu1 %v896_v9  ;;  %vm131_vm1 = vcmp.gt.bf16.partialorder %v1094_v5, 0  ;;  %v505_v9 = vsel %vm132_vm2, 65537, %v1031_v7 }
  0x3f   :  { %814 = vmatprep.subr.bf16.mxu1 %v897_v10 }
  0x41   :  { %835 = vmatpush3.bf16.msra.mxu0 %v888_v4 }
  0x42   :  { %836 = vmatprep.subr.bf16.mxu0 %v1029_v0 }
  0x45   :  { %837 = vmatpush3.bf16.msra.mxu0 %v889_v8  ;;  %v504_v8 = vsel %vm131_vm1, 65537, %v1031_v7 }
  0x46   :  { %838 = vmatprep.subr.bf16.mxu0 %v1029_v0  ;;  %815 = vmatpush3.bf16.xpose.msra.mxu1 %v898_v13  ;;  %v506_v10 = vunpack.c.l.b16 %v504_v8  ;;  %v509_v13 = vunpack.c.h.b16 %v505_v9 }
  0x47   :  { %816 = vmatprep.subr.bf16.mxu1 %v899_v14 }
  0x48   :  { %vm510_vm3 = vcmp.ne.s32.totalorder %v506_v10, 0  ;;  %vm513_vm6 = vcmp.ne.s32.totalorder %v509_v13, 0 }
  0x49   :  { %839 = vmatpush3.bf16.msra.mxu0 %v890_v11  ;;  %v507_v11 = vunpack.c.h.b16 %v504_v8 }
  0x4a   :  { %840 = vmatprep.subr.bf16.mxu0 %v1029_v0 }
  0x4b   :  { %vm511_vm4 = vcmp.ne.s32.totalorder %v507_v11, 0 }
  0x4d   :  { %841 = vmatpush3.bf16.msra.mxu0 %v891_v12  ;;  %v508_v12 = vunpack.c.l.b16 %v505_v9 }
  0x4e   :  { %842 = vmatprep.subr.bf16.mxu0 %v1029_v0  ;;  %817 = vmatpush3.bf16.xpose.msra.mxu1 %v900_v19 }
  0x4f   :  { %818 = vmatprep.subr.bf16.mxu1 %v901_v20  ;;  %vm512_vm5 = vcmp.ne.s32.totalorder %v508_v12, 0 }
  0x51   :  { %843 = vmatpush3.bf16.msra.mxu0 %v892_v15 }
  0x54   :  { %845 = vmatmul.mubr.bf16.vlgmr.msra.gmra.mxu0 %v80_v18 }
  0x56   :  { %819 = vmatpush3.bf16.xpose.msra.mxu1 %v902_v21 }
  0x57   :  { %820 = vmatprep.subr.bf16.mxu1 %v903_v22 }
  0x5e   :  { %821 = vmatpush3.bf16.xpose.msra.mxu1 %v904_v23  ;;  %v494_v23 = vlaneseq }
  0x5f   :  { %822 = vmatprep.subr.bf16.mxu1 %v905_v24 }
  0x66   :  { %823 = vmatpush3.bf16.xpose.msra.mxu1 %v906_v25 }
  0x67   :  { %824 = vmatprep.subr.bf16.mxu1 %v907_v26 }
  0x6e   :  { %825 = vmatpush3.bf16.xpose.msra.mxu1 %v908_v27 }
 0x114   :  { %v215_v28 = vpop.f32.mrf.mxu0 }
 0x116   :  { %v846_v29 = vpop.f32.mrf.mxu0 }
 0x118   :  { %v218_v30 = vpop.f32.mrf.mxu0 }
 0x119   :  { %v222_v31 = vpack.c.bf16 %v218_v30, %v215_v28  ;;  %v495_v28 = vshrl.u32 %v494_v23, 7 }
 0x11a   :  { %v847_v32 = vpop.f32.mrf.mxu0 }
 0x11b   :  { %826 = vmatprep.mubr.bf16.mxu1 %v222_v31 }
 0x11c   :  { %827 = vmatmul.mubr.bf16.vlgmr.msra.gmra.mxu1 %v222_v31 }
 0x1dc   :  { %v353_v33 = vpop.f32.mrf.mxu1 }
 0x1de   :  { %v355_v34 = vpop.f32.mrf.mxu1 }
 0x1df   :  { %v362_v35 = vadd.f32 %v355_v34, %v353_v33 }
 0x1e0   :  { %v357_v36 = vpop.f32.mrf.mxu1 }
 0x1e1   :  { %v363_v37 = vadd.f32 %v362_v35, %v357_v36 }
 0x1e2   :  { %v359_v38 = vpop.f32.mrf.mxu1 }
 0x1e3   :  { %v364_v39 = vadd.f32 %v363_v37, %v359_v38 }
 0x1e5   :  { %365 = vadd.xlane.f32.xlu0 %v364_v39 }
 0x26e   :  { %v366_v40 = vpop.xlane.xlu0 %365 }
 0x26f   :  { %v367_v41 = vrot.slane %v366_v40, 4 }
 0x271   :  { %v368_v42 = vadd.f32 %v367_v41, %v366_v40 }
 0x273   :  { %v369_v43 = vrot.slane %v368_v42, 2 }
 0x275   :  { %v370_v44 = vadd.f32 %v369_v43, %v368_v42 }
 0x277   :  { %v371_v45 = vrot.slane %v370_v44, 1 }
 0x279   :  { %v372_v46 = vadd.f32 %v371_v45, %v370_v44 }
 0x27b   :  { %848 = vpush %v372_v46 }
 0x2ac   :  { %s849_s2 = spop %848 }
 0x2ad   :  { %s374_s3 = smul.f32 0.00024414063, %s849_s2 }
 0x2af   :  { %v375_v47 = vstv %s374_s3 }
 0x2b0   :  { %v376_v48 = vsub.f32 %v353_v33, %v375_v47  ;;  %v377_v49 = vsub.f32 %v355_v34, %v375_v47  ;;  %v378_v50 = vsub.f32 %v357_v36, %v375_v47  ;;  %v379_v51 = vsub.f32 %v359_v38, %v375_v47 }
 0x2b1   :  { %v496_v33 = vadd.s32 8, %v495_v28  ;;  %v497_v38 = vcvt.s32.f32 %v495_v28 }
 0x2b2   :  { %v380_v52 = vmul.f32 %v376_v48, %v376_v48  ;;  %v381_v53 = vmul.f32 %v377_v49, %v377_v49  ;;  %v382_v54 = vmul.f32 %v378_v50, %v378_v50  ;;  %v383_v56 = vmul.f32 %v379_v51, %v379_v51 }
 0x2b3   :  { %v498_v39 = vcvt.s32.f32 %v496_v33 }
 0x2b4   :  { %v384_v55 = vadd.f32 %v381_v53, %v380_v52 }
 0x2b6   :  { %v385_v57 = vadd.f32 %v384_v55, %v382_v54 }
 0x2b8   :  { %v386_v58 = vadd.f32 %v385_v57, %v383_v56 }
 0x2ba   :  { %387 = vadd.xlane.f32.xlu0 %v386_v58 }
 0x343   :  { %v388_v59 = vpop.xlane.xlu0 %387 }
 0x344   :  { %v389_v60 = vrot.slane %v388_v59, 4 }
 0x346   :  { %v390_v61 = vadd.f32 %v389_v60, %v388_v59 }
 0x348   :  { %v391_v62 = vrot.slane %v390_v61, 2 }
 0x34a   :  { %v392_v63 = vadd.f32 %v391_v62, %v390_v61 }
 0x34c   :  { %v393_v1 = vrot.slane %v392_v63, 1 }
 0x34e   :  { %v394_v2 = vadd.f32 %v393_v1, %v392_v63 }
 0x350   :  { %850 = vpush %v394_v2 }
 0x381   :  { %s851_s19 = spop %850 }
 0x382   :  { %s396_s20 = smul.f32 0.00024420026, %s851_s19 }
 0x384   :  { %s397_s21 = sadd.f32 1e-12, %s396_s20 }
 0x386   :  { %v398_v3 = vstv %s397_s21 }
 0x387   :  { %909 = vrsqrt.f32 %v398_v3 }
 0x394   :  { %v910_v4 = vpop.eup %909 }
 0x395   :  { %852 = vpush %v910_v4 }
 0x3c6   :  { %s853_s22 = spop %852 }
 0x3c7   :  { %v401_v14 = vstv %s853_s22 }
 0x3c8   :  { %v1106_v15 = vmul.f32 %v401_v14, %v376_v48  ;;  %v1108_v16 = vmul.f32 %v401_v14, %v377_v49  ;;  %v1110_v17 = vmul.f32 %v401_v14, %v378_v50  ;;  %v1112_v18 = vmul.f32 %v401_v14, %v379_v51 }
 0x3ca   :  { %v514_v19 = vsel %vm510_vm3, %v1106_v15, -1e+30  ;;  %v515_v20 = vsel %vm511_vm4, %v1108_v16, -1e+30  ;;  %v516_v21 = vsel %vm512_vm5, %v1110_v17, -1e+30 }
 0x3cb   :  { %v517_v22 = vsel %vm513_vm6, %v1112_v18, -1e+30  ;;  %v518_v24 = vmax.f32 %v514_v19, %v516_v21 }
 0x3cc   :  { %v525_v25 = vmax.f32 %v515_v20, %v517_v22 }
 0x3cd   :  { %v519_v26 = vrot.slane %v518_v24, 4 }
 0x3ce   :  { %v526_v27 = vrot.slane %v525_v25, 4 }
 0x3cf   :  { %v520_v29 = vmax.f32 %v518_v24, %v519_v26 }
 0x3d0   :  { %v527_v30 = vmax.f32 %v525_v25, %v526_v27 }
 0x3d1   :  { %v521_v31 = vrot.slane %v520_v29, 2 }
 0x3d2   :  { %v528_v32 = vrot.slane %v527_v30, 2 }
 0x3d3   :  { %v522_v34 = vmax.f32 %v520_v29, %v521_v31 }
 0x3d4   :  { %v529_v35 = vmax.f32 %v527_v30, %v528_v32 }
 0x3d5   :  { %v523_v36 = vrot.slane %v522_v34, 1 }
 0x3d6   :  { %v530_v37 = vrot.slane %v529_v35, 1 }
 0x3d7   :  { %v524_v40 = vmax.f32 %v522_v34, %v523_v36 }
 0x3d8   :  { %v531_v41 = vmax.f32 %v529_v35, %v530_v37 }
 0x3d9   :  { %vm532_vm7 = vcmp.eq.f32.partialorder %v514_v19, %v524_v40  ;;  %vm534_vm9 = vcmp.eq.f32.partialorder %v516_v21, %v524_v40  ;;  %v500_v19 = vand.u32 127, %v494_v23 }
 0x3da   :  { %vm533_vm8 = vcmp.eq.f32.partialorder %v515_v20, %v531_v41  ;;  %vm535_vm10 = vcmp.eq.f32.partialorder %v517_v22, %v531_v41  ;;  %v536_v42 = vsel %vm532_vm7, %v497_v38, 16.0  ;;  %v538_v44 = vsel %vm534_vm9, %v498_v39, 16.0 }
 0x3db   :  { %v537_v43 = vsel %vm533_vm8, %v497_v38, 16.0  ;;  %v539_v45 = vsel %vm535_vm10, %v498_v39, 16.0  ;;  %v540_v46 = vmin.f32 %v536_v42, %v538_v44  ;;  %v501_v20 = vadd.s32 128, %v500_v19 }
 0x3dc   :  { %v547_v47 = vmin.f32 %v537_v43, %v539_v45  ;;  %v1138_v21 = vcvt.s32.f32 %v500_v19 }
 0x3dd   :  { %v541_v48 = vrot.slane %v540_v46, 4  ;;  %v1140_v22 = vcvt.s32.f32 %v501_v20 }
 0x3de   :  { %v548_v49 = vrot.slane %v547_v47, 4 }
 0x3df   :  { %v542_v50 = vmin.f32 %v540_v46, %v541_v48 }
 0x3e0   :  { %v549_v51 = vmin.f32 %v547_v47, %v548_v49 }
 0x3e1   :  { %v543_v52 = vrot.slane %v542_v50, 2 }
 0x3e2   :  { %v550_v53 = vrot.slane %v549_v51, 2 }
 0x3e3   :  { %v544_v54 = vmin.f32 %v542_v50, %v543_v52 }
 0x3e4   :  { %v551_v55 = vmin.f32 %v549_v51, %v550_v53 }
 0x3e5   :  { %v545_v56 = vrot.slane %v544_v54, 1 }
 0x3e6   :  { %v552_v57 = vrot.slane %v551_v55, 1 }
 0x3e7   :  { %v546_v58 = vmin.f32 %v544_v54, %v545_v56 }
 0x3e8   :  { %v553_v59 = vmin.f32 %v551_v55, %v552_v57 }
 0x3e9   :  { %vm554_vm11 = vcmp.eq.f32.partialorder %v497_v38, %v546_v58  ;;  %vm556_vm13 = vcmp.eq.f32.partialorder %v498_v39, %v546_v58 }
 0x3ea   :  { %vm555_vm12 = vcmp.eq.f32.partialorder %v497_v38, %v553_v59  ;;  %vm557_vm14 = vcmp.eq.f32.partialorder %v498_v39, %v553_v59 }
 0x3eb   :  { %vm558_vm15 = vmpackc.low %vm555_vm12, %vm554_vm11 }
 0x3ec   :  { %vm560_vm0 = vmand %vm131_vm1, %vm558_vm15 }
 0x3ed   :  { %v562_v60 = vsel %vm560_vm0, 65537, %v1031_v7  ;;  %vm559_vm3 = vmpackc.low %vm557_vm14, %vm556_vm13 }
 0x3ee   :  { %v564_v61 = vunpack.c.l.b16 %v562_v60  ;;  %v565_v62 = vunpack.c.h.b16 %v562_v60  ;;  %vm561_vm4 = vmand %vm132_vm2, %vm559_vm3 }
 0x3ef   :  { %v563_v63 = vsel %vm561_vm4, 65537, %v1031_v7 }
 0x3f0   :  { %vm568_vm5 = vcmp.ne.s32.totalorder %v564_v61, 0  ;;  %vm569_vm6 = vcmp.ne.s32.totalorder %v565_v62, 0  ;;  %v566_v1 = vunpack.c.l.b16 %v563_v63  ;;  %v567_v2 = vunpack.c.h.b16 %v563_v63 }
 0x3f1   :  { %v591_v3 = vsel %vm568_vm5, %v1106_v15, -1e+30  ;;  %v592_v4 = vsel %vm569_vm6, %v1108_v16, -1e+30  ;;  %v797_v5 = vsel %vm568_vm5, 1.0, %v1029_v0  ;;  %v798_v8 = vsel %vm569_vm6, 1.0, %v1029_v0 }
 0x3f2   :  { %v595_v9 = vmax.f32 %v591_v3, %v592_v4  ;;  %vm570_vm1 = vcmp.ne.s32.totalorder %v566_v1, 0  ;;  %vm571_vm7 = vcmp.ne.s32.totalorder %v567_v2, 0  ;;  %v1129_v10 = vadd.f32 %v798_v8, %v797_v5 }
 0x3f3   :  { %v593_v6 = vsel %vm570_vm1, %v1110_v17, -1e+30  ;;  %v594_v7 = vsel %vm571_vm7, %v1112_v18, -1e+30  ;;  %v799_v11 = vsel %vm570_vm1, 1.0, %v1029_v0  ;;  %v800_v12 = vsel %vm571_vm7, 1.0, %v1029_v0 }
 0x3f4   :  { %596 = vmax.xlane.f32.xlu1 %v595_v9  ;;  %v1135_v13 = vadd.f32 %v800_v12, %v799_v11  ;;  %v598_v14 = vmax.f32 %v593_v6, %v594_v7  ;;  %vm588_vm5 = vcmask 7168   ;;  %v454_v9 = vmax.f32 %v1106_v15, %v1108_v16 }
 0x3f8   :  { %599 = vmax.xlane.f32.xlu1 %v598_v14 }
 0x47d   :  { %v597_v24 = vpop.xlane.xlu1 %596 }
 0x47e   :  { %vm601_vm2 = vcmp.eq.f32.partialorder %v591_v3, %v597_v24  ;;  %vm602_vm8 = vcmp.eq.f32.partialorder %v592_v4, %v597_v24  ;;  %vm605_vm9 = vcmp.gt.f32.partialorder %v597_v24, -1e+30 }
 0x47f   :  { %vm611_vm10 = vmand %vm601_vm2, %vm605_vm9 }
 0x480   :  { %vm612_vm11 = vmand %vm602_vm8, %vm605_vm9  ;;  %v615_v0 = vsel %vm611_vm10, %v1138_v21, 256.0 }
 0x481   :  { %v600_v25 = vpop.xlane.xlu1 %599  ;;  %v616_v26 = vsel %vm612_vm11, %v1140_v22, 256.0 }
 0x482   :  { %vm603_vm12 = vcmp.eq.f32.partialorder %v593_v6, %v600_v25  ;;  %vm604_vm13 = vcmp.eq.f32.partialorder %v594_v7, %v600_v25  ;;  %vm606_vm14 = vcmp.gt.f32.partialorder %v600_v25, -1e+30  ;;  %v619_v23 = vmin.f32 %v615_v0, %v616_v26 }
 0x483   :  { %vm613_vm15 = vmand %vm603_vm12, %vm606_vm14 }
 0x484   :  { %620 = vmin.xlane.f32.xlu0 %v619_v23  ;;  %vm614_vm0 = vmand %vm604_vm13, %vm606_vm14  ;;  %v617_v27 = vsel %vm613_vm15, %v1138_v21, 256.0 }
 0x485   :  { %v618_v28 = vsel %vm614_vm0, %v1140_v22, 256.0 }
 0x486   :  { %v622_v29 = vmin.f32 %v617_v27, %v618_v28 }
 0x488   :  { %623 = vmin.xlane.f32.xlu1 %v622_v29 }
 0x50d   :  { %v621_v30 = vpop.xlane.xlu0 %620 }
 0x50e   :  { %v858_v31 = vtrunc.f32 %v621_v30  ;;  %vm629_vm3 = vcmp.eq.f32.partialorder %v1138_v21, %v621_v30  ;;  %vm630_vm4 = vcmp.eq.f32.partialorder %v1140_v22, %v621_v30 }
 0x50f   :  { %v633_v32 = vsel %vm629_vm3, -1e+30, %v591_v3  ;;  %v634_v33 = vsel %vm630_vm4, -1e+30, %v592_v4  ;;  %vm669_vm4 = vcmask 15368  }
 0x510   :  { %v859_v34 = vcvt.f32.s32 %v858_v31  ;;  %v637_v35 = vmax.f32 %v633_v32, %v634_v33 }
 0x511   :  { %v624_v36 = vpop.xlane.xlu1 %623 }
 0x512   :  { %627 = vst.msk [vmem:[%s1289_s5] sm:$0xff] %vm588_vm5, %v859_v34  ;;  %v860_v37 = vtrunc.f32 %v624_v36  ;;  %vm631_vm6 = vcmp.eq.f32.partialorder %v1138_v21, %v624_v36  ;;  %vm632_vm1 = vcmp.eq.f32.partialorder %v1140_v22, %v624_v36  ;;  %638 = vmax.xlane.f32.xlu0 %v637_v35 }
 0x513   :  { %v635_v38 = vsel %vm631_vm6, -1e+30, %v593_v6  ;;  %v636_v39 = vsel %vm632_vm1, -1e+30, %v594_v7  ;;  %v457_v6 = vmax.f32 %v1110_v17, %v1112_v18 }
 0x514   :  { %v861_v40 = vcvt.f32.s32 %v860_v37  ;;  %v640_v41 = vmax.f32 %v635_v38, %v636_v39 }
 0x516   :  { %628 = vst.msk [vmem:[%s1289_s5 + $0x8] sm:$0xff] %vm588_vm5, %v861_v40  ;;  %641 = vmax.xlane.f32.xlu1 %v640_v41 }
 0x59b   :  { %v639_v42 = vpop.xlane.xlu0 %638 }
 0x59c   :  { %vm643_vm7 = vcmp.eq.f32.partialorder %v633_v32, %v639_v42  ;;  %vm644_vm2 = vcmp.eq.f32.partialorder %v634_v33, %v639_v42  ;;  %vm647_vm8 = vcmp.gt.f32.partialorder %v639_v42, -1e+30 }
 0x59d   :  { %vm653_vm9 = vmand %vm643_vm7, %vm647_vm8 }
 0x59e   :  { %vm654_vm10 = vmand %vm644_vm2, %vm647_vm8  ;;  %v657_v43 = vsel %vm653_vm9, %v1138_v21, 256.0 }
 0x59f   :  { %v642_v44 = vpop.xlane.xlu1 %641  ;;  %v658_v45 = vsel %vm654_vm10, %v1140_v22, 256.0 }
 0x5a0   :  { %vm645_vm11 = vcmp.eq.f32.partialorder %v635_v38, %v642_v44  ;;  %vm646_vm12 = vcmp.eq.f32.partialorder %v636_v39, %v642_v44  ;;  %vm648_vm13 = vcmp.gt.f32.partialorder %v642_v44, -1e+30  ;;  %v661_v46 = vmin.f32 %v657_v43, %v658_v45 }
 0x5a1   :  { %vm655_vm14 = vmand %vm645_vm11, %vm648_vm13  ;;  %v406_v44 = vmax.f32 %v1106_v15, %v1110_v17  ;;  %v413_v45 = vmax.f32 %v1108_v16, %v1112_v18 }
 0x5a2   :  { %662 = vmin.xlane.f32.xlu0 %v661_v46  ;;  %vm656_vm15 = vmand %vm646_vm12, %vm648_vm13  ;;  %v659_v47 = vsel %vm655_vm14, %v1138_v21, 256.0 }
 0x5a3   :  { %v660_v48 = vsel %vm656_vm15, %v1140_v22, 256.0  ;;  %v407_v46 = vrot.slane %v406_v44, 4 }
 0x5a4   :  { %v664_v49 = vmin.f32 %v659_v47, %v660_v48  ;;  %v414_v47 = vrot.slane %v413_v45, 4 }
 0x5a5   :  { %v408_v48 = vmax.f32 %v406_v44, %v407_v46 }
 0x5a6   :  { %665 = vmin.xlane.f32.xlu1 %v664_v49  ;;  %v415_v49 = vmax.f32 %v413_v45, %v414_v47 }
 0x62b   :  { %v663_v50 = vpop.xlane.xlu0 %662 }
 0x62c   :  { %v862_v51 = vtrunc.f32 %v663_v50  ;;  %vm672_vm0 = vcmp.eq.f32.partialorder %v1138_v21, %v663_v50  ;;  %vm673_vm3 = vcmp.eq.f32.partialorder %v1140_v22, %v663_v50  ;;  %v409_v50 = vrot.slane %v408_v48, 2 }
 0x62d   :  { %v676_v52 = vsel %vm672_vm0, -1e+30, %v633_v32  ;;  %v677_v53 = vsel %vm673_vm3, -1e+30, %v634_v33 }
 0x62e   :  { %v863_v54 = vcvt.f32.s32 %v862_v51  ;;  %v680_v55 = vmax.f32 %v676_v52, %v677_v53  ;;  %v416_v51 = vrot.slane %v415_v49, 2 }
 0x62f   :  { %v666_v56 = vpop.xlane.xlu1 %665 }
 0x630   :  { %670 = vst.msk [vmem:[%s1289_s5] sm:$0xff] %vm669_vm4, %v863_v54  ;;  %v864_v57 = vtrunc.f32 %v666_v56  ;;  %vm674_vm6 = vcmp.eq.f32.partialorder %v1138_v21, %v666_v56  ;;  %vm675_vm1 = vcmp.eq.f32.partialorder %v1140_v22, %v666_v56  ;;  %681 = vmax.xlane.f32.xlu0 %v680_v55 }
 0x631   :  { %v678_v58 = vsel %vm674_vm6, -1e+30, %v635_v38  ;;  %v679_v59 = vsel %vm675_vm1, -1e+30, %v636_v39 }
 0x632   :  { %v865_v60 = vcvt.f32.s32 %v864_v57  ;;  %v683_v61 = vmax.f32 %v678_v58, %v679_v59 }
 0x634   :  { %671 = vst.msk [vmem:[%s1289_s5 + $0x8] sm:$0xff] %vm669_vm4, %v865_v60  ;;  %684 = vmax.xlane.f32.xlu1 %v683_v61  ;;  %vm712_vm4 = vcmask 23568  }
 0x6b9   :  { %v682_v62 = vpop.xlane.xlu0 %681 }
 0x6ba   :  { %vm686_vm7 = vcmp.eq.f32.partialorder %v676_v52, %v682_v62  ;;  %vm687_vm2 = vcmp.eq.f32.partialorder %v677_v53, %v682_v62  ;;  %vm690_vm8 = vcmp.gt.f32.partialorder %v682_v62, -1e+30 }
 0x6bb   :  { %vm696_vm9 = vmand %vm686_vm7, %vm690_vm8 }
 0x6bc   :  { %vm697_vm10 = vmand %vm687_vm2, %vm690_vm8  ;;  %v700_v63 = vsel %vm696_vm9, %v1138_v21, 256.0 }
 0x6bd   :  { %v685_v1 = vpop.xlane.xlu1 %684  ;;  %v701_v2 = vsel %vm697_vm10, %v1140_v22, 256.0 }
 0x6be   :  { %vm688_vm11 = vcmp.eq.f32.partialorder %v678_v58, %v685_v1  ;;  %vm689_vm12 = vcmp.eq.f32.partialorder %v679_v59, %v685_v1  ;;  %vm691_vm13 = vcmp.gt.f32.partialorder %v685_v1, -1e+30  ;;  %v704_v3 = vmin.f32 %v700_v63, %v701_v2 }
 0x6bf   :  { %vm698_vm14 = vmand %vm688_vm11, %vm691_vm13 }
 0x6c0   :  { %705 = vmin.xlane.f32.xlu0 %v704_v3  ;;  %vm699_vm15 = vmand %vm689_vm12, %vm691_vm13  ;;  %v702_v4 = vsel %vm698_vm14, %v1138_v21, 256.0 }
 0x6c1   :  { %v703_v5 = vsel %vm699_vm15, %v1140_v22, 256.0 }
 0x6c2   :  { %v707_v8 = vmin.f32 %v702_v4, %v703_v5 }
 0x6c4   :  { %708 = vmin.xlane.f32.xlu1 %v707_v8  ;;  %455 = vmax.xlane.f32.xlu0 %v454_v9 }
 0x6c8   :  { %458 = vmax.xlane.f32.xlu1 %v457_v6 }
 0x749   :  { %v706_v7 = vpop.xlane.xlu0 %705 }
 0x74a   :  { %v866_v11 = vtrunc.f32 %v706_v7  ;;  %vm715_vm0 = vcmp.eq.f32.partialorder %v1138_v21, %v706_v7  ;;  %vm716_vm3 = vcmp.eq.f32.partialorder %v1140_v22, %v706_v7 }
 0x74b   :  { %v1182_v12 = vsel %vm715_vm0, -1e+30, %v676_v52  ;;  %v1184_v14 = vsel %vm716_vm3, -1e+30, %v677_v53  ;;  %v410_v52 = vmax.f32 %v408_v48, %v409_v50  ;;  %v417_v53 = vmax.f32 %v415_v49, %v416_v51 }
 0x74c   :  { %v867_v19 = vcvt.f32.s32 %v866_v11  ;;  %v723_v20 = vmax.f32 %v1182_v12, %v1184_v14 }
 0x74d   :  { %v709_v24 = vpop.xlane.xlu1 %708  ;;  %v456_v0 = vpop.xlane.xlu0 %455  ;;  %v411_v54 = vrot.slane %v410_v52, 1  ;;  %v418_v55 = vrot.slane %v417_v53, 1 }
 0x74e   :  { %713 = vst.msk [vmem:[%s1289_s5] sm:$0xff] %vm712_vm4, %v867_v19  ;;  %v868_v25 = vtrunc.f32 %v709_v24  ;;  %v1193_v26 = vsub.f32 %v1106_v15, %v456_v0  ;;  %v1196_v23 = vsub.f32 %v1108_v16, %v456_v0  ;;  %724 = vmax.xlane.f32.xlu0 %v723_v20  ;;  %vm717_vm6 = vcmp.eq.f32.partialorder %v1138_v21, %v709_v24 }
 0x74f   :  { %vm718_vm1 = vcmp.eq.f32.partialorder %v1140_v22, %v709_v24  ;;  %v1200_v27 = vsel %vm717_vm6, -1e+30, %v678_v58  ;;  %v412_v56 = vmax.f32 %v410_v52, %v411_v54 }
 0x750   :  { %v869_v28 = vcvt.f32.s32 %v868_v25  ;;  %v464_v29 = vmul.f32 1.442695, %v1193_v26  ;;  %v466_v30 = vmul.f32 1.442695, %v1196_v23  ;;  %v1204_v31 = vsel %vm718_vm1, -1e+30, %v679_v59 }
 0x751   :  { %v459_v32 = vpop.xlane.xlu1 %458  ;;  %v726_v33 = vmax.f32 %v1200_v27, %v1204_v31  ;;  %v1236_v59 = vsub.f32 %v1106_v15, %v412_v56 }
 0x752   :  { %714 = vst.msk [vmem:[%s1289_s5 + $0x8] sm:$0xff] %vm712_vm4, %v869_v28  ;;  %911 = vpow2.f32 %v464_v29  ;;  %v1213_v34 = vsub.f32 %v1110_v17, %v459_v32  ;;  %v1216_v35 = vsub.f32 %v1112_v18, %v459_v32 }
 0x753   :  { %913 = vpow2.f32 %v466_v30  ;;  %727 = vmax.xlane.f32.xlu1 %v726_v33  ;;  %v424_v63 = vmul.f32 1.442695, %v1236_v59 }
 0x754   :  { %v468_v36 = vmul.f32 1.442695, %v1213_v34  ;;  %v470_v37 = vmul.f32 1.442695, %v1216_v35 }
 0x756   :  { %915 = vpow2.f32 %v468_v36 }
 0x757   :  { %917 = vpow2.f32 %v470_v37 }
 0x75f   :  { %v912_v38 = vpop.eup %911 }
 0x760   :  { %v914_v39 = vpop.eup %913 }
 0x761   :  { %v472_v40 = vadd.f32 %v914_v39, %v912_v38 }
 0x763   :  { %v916_v41 = vpop.eup %915  ;;  %473 = vadd.xlane.f32.xlu0 %v472_v40 }
 0x764   :  { %v918_v42 = vpop.eup %917 }
 0x765   :  { %v475_v43 = vadd.f32 %v918_v42, %v916_v41 }
 0x767   :  { %476 = vadd.xlane.f32.xlu1 %v475_v43  ;;  %581 = vadd.xlane.f32.xlu0 %v1129_v10  ;;  %v419_v10 = vmax.f32 %v417_v53, %v418_v55 }
 0x769   :  { %v1230_v57 = vsub.f32 %v1112_v18, %v419_v10  ;;  %v1233_v58 = vsub.f32 %v1108_v16, %v419_v10 }
 0x76b   :  { %584 = vadd.xlane.f32.xlu1 %v1135_v13  ;;  %v1227_v13 = vsub.f32 %v1110_v17, %v412_v56  ;;  %v430_v61 = vmul.f32 1.442695, %v1230_v57  ;;  %v426_v62 = vmul.f32 1.442695, %v1233_v58 }
 0x76d   :  { %v428_v60 = vmul.f32 1.442695, %v1227_v13 }
 0x76f   :  { %919 = vpow2.f32 %v428_v60 }
 0x770   :  { %921 = vpow2.f32 %v430_v61 }
 0x771   :  { %923 = vpow2.f32 %v426_v62 }
 0x772   :  { %925 = vpow2.f32 %v424_v63 }
 0x77c   :  { %v920_v17 = vpop.eup %919 }
 0x77d   :  { %v922_v18 = vpop.eup %921 }
 0x77e   :  { %v924_v1 = vpop.eup %923 }
 0x77f   :  { %v926_v16 = vpop.eup %925  ;;  %v439_v2 = vadd.f32 %v924_v1, %v922_v18 }
 0x780   :  { %v432_v3 = vadd.f32 %v926_v16, %v920_v17 }
 0x781   :  { %v440_v15 = vrot.slane %v439_v2, 4 }
 0x782   :  { %v433_v4 = vrot.slane %v432_v3, 4 }
 0x783   :  { %v441_v5 = vadd.f32 %v440_v15, %v439_v2 }
 0x784   :  { %v434_v8 = vadd.f32 %v433_v4, %v432_v3 }
 0x785   :  { %v442_v6 = vrot.slane %v441_v5, 2 }
 0x786   :  { %v435_v7 = vrot.slane %v434_v8, 2 }
 0x787   :  { %v443_v0 = vadd.f32 %v442_v6, %v441_v5 }
 0x789   :  { %v444_v28 = vrot.slane %v443_v0, 1 }
 0x78b   :  { %v445_v32 = vadd.f32 %v444_v28, %v443_v0 }
 0x78d   :  { %927 = vlog2.f32 %v445_v32 }
 0x79a   :  { %v928_v40 = vpop.eup %927 }
 0x79b   :  { %v449_v42 = vmul.f32 0.6931472, %v928_v40 }
 0x79d   :  { %v451_v46 = vsub.f32 %v1233_v58, %v449_v42  ;;  %v453_v54 = vsub.f32 %v1230_v57, %v449_v42 }
 0x7d7   :  { %v725_v9 = vpop.xlane.xlu0 %724 }
 0x7d8   :  { %vm729_vm7 = vcmp.eq.f32.partialorder %v1182_v12, %v725_v9  ;;  %vm730_vm2 = vcmp.eq.f32.partialorder %v1184_v14, %v725_v9  ;;  %vm733_vm8 = vcmp.gt.f32.partialorder %v725_v9, -1e+30  ;;  %v436_v12 = vadd.f32 %v435_v7, %v434_v8 }
 0x7d9   :  { %vm739_vm9 = vmand %vm729_vm7, %vm733_vm8 }
 0x7da   :  { %vm740_vm10 = vmand %vm730_vm2, %vm733_vm8  ;;  %v743_v11 = vsel %vm739_vm9, %v1138_v21, 256.0  ;;  %v437_v30 = vrot.slane %v436_v12, 1 }
 0x7db   :  { %v744_v19 = vsel %vm740_vm10, %v1140_v22, 256.0 }
 0x7dc   :  { %v728_v20 = vpop.xlane.xlu1 %727  ;;  %v747_v24 = vmin.f32 %v743_v11, %v744_v19  ;;  %v438_v33 = vadd.f32 %v437_v30, %v436_v12 }
 0x7dd   :  { %vm731_vm11 = vcmp.eq.f32.partialorder %v1200_v27, %v728_v20  ;;  %vm732_vm12 = vcmp.eq.f32.partialorder %v1204_v31, %v728_v20  ;;  %vm734_vm13 = vcmp.gt.f32.partialorder %v728_v20, -1e+30 }
 0x7de   :  { %748 = vmin.xlane.f32.xlu0 %v747_v24  ;;  %vm741_vm14 = vmand %vm731_vm11, %vm734_vm13  ;;  %929 = vlog2.f32 %v438_v33 }
 0x7df   :  { %vm742_vm15 = vmand %vm732_vm12, %vm734_vm13  ;;  %v745_v14 = vsel %vm741_vm14, %v1138_v21, 256.0 }
 0x7e0   :  { %v746_v25 = vsel %vm742_vm15, %v1140_v22, 256.0 }
 0x7e1   :  { %v750_v29 = vmin.f32 %v745_v14, %v746_v25 }
 0x7e3   :  { %751 = vmin.xlane.f32.xlu1 %v750_v29 }
 0x7eb   :  { %v930_v22 = vpop.eup %929 }
 0x7ec   :  { %v474_v27 = vpop.xlane.xlu0 %473  ;;  %v447_v43 = vmul.f32 0.6931472, %v930_v22 }
 0x7ed   :  { %931 = vlog2.f32 %v474_v27 }
 0x7ee   :  { %v450_v47 = vsub.f32 %v1236_v59, %v447_v43  ;;  %v452_v55 = vsub.f32 %v1227_v13, %v447_v43 }
 0x7f0   :  { %v477_v31 = vpop.xlane.xlu1 %476  ;;  %v582_v36 = vpop.xlane.xlu0 %581 }
 0x7f1   :  { %933 = vlog2.f32 %v477_v31  ;;  %v854_v37 = vtrunc.f32 %v582_v36 }
 0x7f3   :  { %v855_v38 = vcvt.f32.s32 %v854_v37 }
 0x7f4   :  { %v585_v39 = vpop.xlane.xlu1 %584 }
 0x7f5   :  { %589 = vst.msk [vmem:[%s1290_s6] sm:$0xff] %vm588_vm5, %v855_v38  ;;  %v856_v21 = vtrunc.f32 %v585_v39 }
 0x7f7   :  { %v857_v41 = vcvt.f32.s32 %v856_v21 }
 0x7f9   :  { %590 = vst.msk [vmem:[%s1290_s6 + $0x8] sm:$0xff] %vm588_vm5, %v857_v41  ;;  %vm755_vm5 = vcmask 31768  }
 0x7fa   :  { %v932_v44 = vpop.eup %931 }
 0x7fb   :  { %v479_v45 = vmul.f32 0.6931472, %v932_v44 }
 0x7fd   :  { %v482_v48 = vsub.f32 %v1193_v26, %v479_v45  ;;  %v483_v49 = vsub.f32 %v1196_v23, %v479_v45 }
 0x7fe   :  { %v934_v50 = vpop.eup %933 }
 0x7ff   :  { %v486_v51 = vadd.f32 %v482_v48, %v450_v47  ;;  %v487_v52 = vadd.f32 %v483_v49, %v451_v46  ;;  %v481_v53 = vmul.f32 0.6931472, %v934_v50 }
 0x801   :  { %490 = vst [vmem:[%s1288_s4] sm:$0xff] %v486_v51  ;;  %491 = vst [vmem:[%s1288_s4 + $0x8] sm:$0xff] %v487_v52  ;;  %v484_v26 = vsub.f32 %v1213_v34, %v481_v53  ;;  %v485_v23 = vsub.f32 %v1216_v35, %v481_v53 }
 0x803   :  { %v488_v56 = vadd.f32 %v484_v26, %v452_v55  ;;  %v489_v10 = vadd.f32 %v485_v23, %v453_v54 }
 0x805   :  { %492 = vst [vmem:[%s1288_s4 + $0x10] sm:$0xff] %v488_v56  ;;  %493 = vst [vmem:[%s1288_s4 + $0x18] sm:$0xff] %v489_v10 }
 0x867   :  { %v749_v58 = vpop.xlane.xlu0 %748 }
 0x868   :  { %v870_v59 = vtrunc.f32 %v749_v58 }
 0x86a   :  { %v871_v57 = vcvt.f32.s32 %v870_v59 }
 0x86c   :  { %756 = vst.msk [vmem:[%s1289_s5] sm:$0xff] %vm755_vm5, %v871_v57  ;;  %v752_v34 = vpop.xlane.xlu1 %751 }
 0x86d   :  { %v872_v35 = vtrunc.f32 %v752_v34 }
 0x86f   :  { %v873_v13 = vcvt.f32.s32 %v872_v35 }
 0x871   :  { %757 = vst.msk [vmem:[%s1289_s5 + $0x8] sm:$0xff] %vm755_vm5, %v873_v13 }
 0x872   :  { %770 = vsyncpa [#allocation3], 1 }
 0x873   :  { %771 = vsyncpa [#allocation5], 1 }
 0x874   :  { %772 = vsyncpa [#allocation8], 1 }

</bundles_post_ra>
